<compile_context>
chip_gen: v7x
topology: tpu7x:2x2x1
jax: 0.10.0
libtpu: 0.0.40
codegen_flags: <defaults>
</compile_context>

<pallas_src>
import functools

import jax
import jax.numpy as jnp
from jax import lax
from jax.experimental import pallas as pl
from jax.experimental.pallas import tpu as pltpu


# ----------------------------------------------------------------------------
# helpers used inside the kernel
# ----------------------------------------------------------------------------
def _layernorm(v, g_ref, b_ref, eps=1e-8):     # reference uses eps=1e-08 explicitly
    mu = jnp.mean(v, axis=-1, keepdims=True)
    var = jnp.mean((v - mu) ** 2, axis=-1, keepdims=True)
    return (v - mu) * lax.rsqrt(var + eps) * g_ref[...] + b_ref[...]


def _mm(x, w_ref, b_ref):
    """x @ W + b, f32 accumulation.  W is pre-transposed (E_in, E_out) and
    already in its final dtype, so no per-step weight casts occur here."""
    return jnp.dot(x, w_ref[...], preferred_element_type=jnp.float32) + b_ref[...]


# ----------------------------------------------------------------------------
# fused kernel: SASRec block (last position only) + trend attention + BPR term
# ----------------------------------------------------------------------------
def _fused_kernel(seq_ref, mask_ref, tgt_ref, ngt_ref, trends_ref, comm_ref,
                  pos_ref,
                  lnA_g, lnA_b,
                  wq_ref, bq_ref, wk_ref, bk_ref, wv_ref, bv_ref,
                  wo_ref, bo_ref,
                  lnF_g, lnF_b,
                  c1w_ref, c1b_ref, c2w_ref, c2b_ref,
                  lnL_g, lnL_b,
                  w1_ref, b1_ref, w2_ref, b2_ref,
                  out_ref, *, scale):
    Bb, L, E = seq_ref.shape
    T = trends_ref.shape[1]
    inv_sqrt_e = 1.0 / (float(E) ** 0.5)

    # scale + positional embedding + timeline mask (emb_dropout == identity)
    mask = mask_ref[...]                                     # (Bb, L)
    x = seq_ref[...] * (float(E) ** 0.5) + pos_ref[...][None, :, :]
    x = x * mask[:, :, None]

    # --- single-head causal MHA restricted to the last query position ---
    # For the last row the causal mask admits every key, and the PyTorch
    # reference applies no key_padding_mask, so no in-kernel masking is needed.
    x_last = x[:, L - 1, :]                                  # (Bb, E)
    q_in = _layernorm(x_last, lnA_g, lnA_b)                  # attention LN (Q only)
    q = _mm(q_in, wq_ref, bq_ref)                            # (Bb, E), f32

    # K/V projections over all (Bb*L) rows: bf16 operands (weights pre-cast
    # host-side), f32 accumulation.  Separate K and V matmuls -> no
    # lane-unaligned split of a fused KV output.
    # NOTE: the (Bb, L, E) -> (Bb*L, E) reshape is layout-free only when
    # L % 8 == 0 (true for the shapes used here).
    x2d = x.reshape(Bb * L, E).astype(jnp.bfloat16)
    k = (jnp.dot(x2d, wk_ref[...], preferred_element_type=jnp.float32)
         + bk_ref[...]).reshape(Bb, L, E)
    v = (jnp.dot(x2d, wv_ref[...], preferred_element_type=jnp.float32)
         + bv_ref[...]).reshape(Bb, L, E)

    # Per-row single-query contractions are batched mat-vecs (M == 1); the MXU
    # gains nothing there, so keep them as VPU broadcast-multiply + reduce.
    scores = jnp.sum(q[:, None, :] * k, axis=-1) * inv_sqrt_e       # (Bb, L)
    attn = jax.nn.softmax(scores, axis=-1)
    mha = jnp.sum(attn[:, :, None] * v, axis=1)                     # (Bb, E)
    mha = _mm(mha, wo_ref, bo_ref)

    y = q_in + mha                                           # residual on Q (as in ref)
    y = _layernorm(y, lnF_g, lnF_b)

    # PointWiseFeedForward: two kernel-size-1 conv1d == per-position matmuls
    h = jnp.maximum(_mm(y, c1w_ref, c1b_ref), 0.0)
    h = _mm(h, c2w_ref, c2b_ref)
    y = (h + y) * mask[:, L - 1:]                            # timeline mask, last pos
    m_last = _layernorm(y, lnL_g, lnL_b)                     # == log_feats[:, -1, :]

    # --- trend attention + cosine gating + BPR; pos/neg batched in ONE pass ---
    tgt = tgt_ref[...]                                       # (Bb, E)
    ngt = ngt_ref[...]                                       # (Bb, E)
    trends = trends_ref[...]                                 # (Bb, T, E)
    comm = comm_ref[...]                                     # (Bb, T)

    both = jnp.stack([tgt, ngt], axis=0)                     # (2, Bb, E)  0=pos 1=neg
    P_both = jnp.sum(m_last[None] * both, axis=-1)           # (2, Bb)

    w1r = _mm(both.reshape(2 * Bb, E), w1_ref, b1_ref).reshape(2, Bb, E)
    w2t = _mm(trends.reshape(Bb * T, E), w2_ref, b2_ref).reshape(Bb, T, E)
    weighted = comm[:, :, None] * trends                     # comm_size_addon * trends

    s = jnp.sum(w1r[:, :, None, :] * w2t[None], axis=-1) * (1.0 / scale)   # (2, Bb, T)
    a = jax.nn.softmax(s, axis=-1)                           # softmax over T
    at = jnp.sum(a[:, :, :, None] * weighted[None], axis=2)  # (2, Bb, E)

    num = jnp.sum(both * at, axis=-1)                        # (2, Bb)
    n1 = jnp.maximum(jnp.sqrt(jnp.sum(both * both, axis=-1)), 1e-8)
    n2 = jnp.maximum(jnp.sqrt(jnp.sum(at * at, axis=-1)), 1e-8)
    cos = jax.nn.sigmoid(num / (n1 * n2))                    # (2, Bb)

    elu1 = lambda z: jnp.where(z > 0, z + 1.0, jnp.exp(jnp.minimum(z, 0.0)))
    logits = elu1(P_both) * cos                              # (2, Bb)
    diff = logits[0] - logits[1]                             # (Bb,) lane-major
    # lane-dense (1, Bb) output row -> unmasked vector stores
    out_ref[...] = jnp.log(jax.nn.sigmoid(diff) + 1e-10)[None, :]


# ----------------------------------------------------------------------------
# pallas_call wrapper (grid over the batch dimension)
# ----------------------------------------------------------------------------
def _pick_batch_tile(B, row_bytes, budget_bytes=24 * 1024 * 1024):
    """Largest batch tile that (a) keeps the lane-dense (1, Bb) output block
    legal (Bb multiple of 128, or one whole-batch tile), and (b) keeps the
    double-buffered batched input blocks within ~half the 48 MiB VMEM limit."""
    if B <= 128:
        return B                                  # one tile == full arrays
    padded = -(-B // 128) * 128
    for bb in (1024, 512, 256, 128):
        if bb <= padded and 2 * row_bytes * bb <= budget_bytes:
            return bb
    return 128


def _batch_spec(full_shape, Bb):
    nd = len(full_shape)
    blk = (Bb,) + tuple(full_shape[1:])
    return pl.BlockSpec(blk, lambda b, _n=nd: (b,) + (0,) * (_n - 1))


def _const_spec(full_shape):
    # Constant block index across the grid -> Pallas keeps the tile resident
    # and does not re-fetch it each step.
    nd = len(full_shape)
    return pl.BlockSpec(tuple(full_shape), lambda b, _n=nd: (0,) * _n)


def _call_fused(seq_rep, mask_f, tgt_rep, ngt_rep, trends_sel, comm_sel,
                params, scale):
    B, L, E = seq_rep.shape
    T = trends_sel.shape[1]

    row_bytes = 4 * (L * E + L + E + E + T * E + T)      # f32 bytes per batch row
    Bb = _pick_batch_tile(B, row_bytes)
    Bp = -(-B // Bb) * Bb
    if Bp != B:   # pad batch so the grid tiles evenly (zero rows are benign; sliced off)
        pad = lambda a: jnp.pad(a, ((0, Bp - B),) + ((0, 0),) * (a.ndim - 1))
        seq_rep, mask_f, tgt_rep, ngt_rep, trends_sel, comm_sel = (
            pad(seq_rep), pad(mask_f), pad(tgt_rep), pad(ngt_rep),
            pad(trends_sel), pad(comm_sel))
    grid = (Bp // Bb,)

    # Split the packed in_proj.  K/V weights pre-cast to bf16 (the (Bb*L)-row
    # hot matmuls); the tiny last-position-only path stays f32 for parity.
    ipw, ipb = params['in_proj_w'], params['in_proj_b']
    wq = ipw[:E].T                                        # (E, E) f32
    wk = ipw[E:2 * E].T.astype(jnp.bfloat16)              # (E, E) bf16
    wv = ipw[2 * E:].T.astype(jnp.bfloat16)               # (E, E) bf16
    bq = ipb[:E].reshape(1, E)
    bk = ipb[E:2 * E].reshape(1, E)
    bv = ipb[2 * E:].reshape(1, E)

    batched = [seq_rep, mask_f, tgt_rep, ngt_rep, trends_sel, comm_sel]
    consts = [
        params['pos_emb'],
        params['ln_attn_g'], params['ln_attn_b'],
        wq, bq, wk, bk, wv, bv,
        params['out_proj_w'].T, params['out_proj_b'],
        params['ln_fwd_g'], params['ln_fwd_b'],
        params['conv1_w'].T, params['conv1_b'],
        params['conv2_w'].T, params['conv2_b'],
        params['ln_last_g'], params['ln_last_b'],
        params['W1_w'].T, params['W1_b'], params['W2_w'].T, params['W2_b'],
    ]
    in_specs = ([_batch_spec(x.shape, Bb) for x in batched]
                + [_const_spec(x.shape) for x in consts])

    out = pl.pallas_call(
        functools.partial(_fused_kernel, scale=float(scale)),
        grid=grid,
        out_shape=jax.ShapeDtypeStruct((1, Bp), jnp.float32),
        in_specs=in_specs,
        out_specs=pl.BlockSpec((1, Bb), lambda b: (0, b)),    # lane-dense output
        compiler_params=pltpu.CompilerParams(
            # batch rows are independent; on v7x this lets both TCs share the grid
            dimension_semantics=("parallel",),
            # safe on v7x (64 MiB physical); can be raised to ~96 MiB on v5e/v6e
            vmem_limit_bytes=48 * 1024 * 1024),
    )(*batched, *consts)
    return out[0, :B]                                         # drop padded rows


# ----------------------------------------------------------------------------
# full forward (gather glue in JAX, hot path in the fused kernel)
# ----------------------------------------------------------------------------
def pure_sasrec_forward(params, slice_items, trends_num, trends_item, log_seqs,
                        targets, negatives, log_slices, tgt_slices, comm_size,
                        scale):
    del trends_num  # unused by the PyTorch forward as well
    NSm1 = slice_items.shape[1]
    item_all_embs = params['item_embs']                 # (V, num_slices-1, E)

    # ---- slice-masked average sequence representation (gather glue) ----
    # TODO(synk): could be fused into a PrefetchScalarGridSpec gather kernel
    # to avoid the (B, L, NSm1, E) HBM intermediate.
    log_slice_onehot = slice_items[log_seqs]            # (B, L, NSm1)
    col = jnp.arange(NSm1)[None, None, :]
    clip = (col <= log_slices[:, :, None]).astype(jnp.float32)
    res = clip * log_slice_onehot
    seq_all_emb = item_all_embs[log_seqs]               # (B, L, NSm1, E)
    sum_masked = jnp.sum(seq_all_emb * res[..., None], axis=2)
    sq = jnp.sum(res[..., None], axis=2)
    sq = jnp.where(sq == 0, 1.0, sq)
    seq_rep = sum_masked / sq                           # (B, L, E)

    def rep_of(ids):                                    # ids: (B,)
        onehot = slice_items[ids]                       # (B, NSm1)
        clip1 = (jnp.arange(NSm1)[None, :] <= tgt_slices).astype(jnp.float32)
        r = clip1 * onehot
        emb = item_all_embs[ids]                        # (B, NSm1, E)
        rep = jnp.sum(emb * r[..., None], axis=1)
        s = jnp.sum(r, axis=1)
        s = jnp.where(s == 0, 1.0, s)
        return rep / s[:, None]

    tgt_rep = rep_of(targets[:, 0])
    ngt_rep = rep_of(negatives[:, 0])

    mask_f = (log_seqs != 0).astype(jnp.float32)

    ts = tgt_slices[:, 0]
    trends_sel = trends_item[ts].astype(jnp.float32)    # (B, T, E)
    comm_sel = comm_size[ts].astype(jnp.float32)        # (B, T)

    # fused kernel returns the per-row log-sigmoid BPR term; mean in JAX
    maxi = _call_fused(seq_rep, mask_f, tgt_rep, ngt_rep, trends_sel, comm_sel,
                       params, scale)
    return -jnp.mean(maxi)


# ----------------------------------------------------------------------------
# deterministic parameter construction (shapes follow the module __init__)
# ----------------------------------------------------------------------------
def init_params(key, num_items, num_slices, emb_size, seq_len):
    NSm1 = num_slices - 1
    E = emb_size
    ks = jax.random.split(key, 12)

    def nrm(k, shape, s=0.1):
        return jax.random.normal(k, shape, jnp.float32) * s

    return dict(
        item_embs=nrm(ks[0], (num_items + 1, NSm1, E)),
        pos_emb=nrm(ks[1], (seq_len, E)),
        ln_attn_g=jnp.ones((1, E), jnp.float32), ln_attn_b=jnp.zeros((1, E), jnp.float32),
        in_proj_w=nrm(ks[2], (3 * E, E)), in_proj_b=jnp.zeros((3 * E,), jnp.float32),
        out_proj_w=nrm(ks[3], (E, E)), out_proj_b=jnp.zeros((1, E), jnp.float32),
        ln_fwd_g=jnp.ones((1, E), jnp.float32), ln_fwd_b=jnp.zeros((1, E), jnp.float32),
        conv1_w=nrm(ks[4], (E, E)), conv1_b=nrm(ks[5], (1, E), 0.05),
        conv2_w=nrm(ks[6], (E, E)), conv2_b=nrm(ks[7], (1, E), 0.05),
        ln_last_g=jnp.ones((1, E), jnp.float32), ln_last_b=jnp.zeros((1, E), jnp.float32),
        W1_w=nrm(ks[8], (E, E)), W1_b=nrm(ks[9], (1, E), 0.05),
        W2_w=nrm(ks[10], (E, E)), W2_b=nrm(ks[11], (1, E), 0.05),
    )


def build_slice_items(num_items, nsm1):
    ids = jnp.arange(num_items + 1)
    col = jnp.arange(nsm1)[None, :]
    onehot = (col == ((ids - 1) % nsm1)[:, None]).astype(jnp.float32)
    return jnp.where(ids[:, None] > 0, onehot, 0.0)


# ----------------------------------------------------------------------------
if __name__ == "__main__":
    B, L, E = 2, 8, 32          # batch, seq_len, emb_size
    num_items = 20
    num_slices = 4              # -> 3 per-slice embedding tables
    T = 5                       # number of trend clusters per slice
    scale = 4.0

    key = jax.random.PRNGKey(0)
    kp, k1, k2, k3, k4, k5, k6, k7 = jax.random.split(key, 8)

    params = init_params(kp, num_items, num_slices, E, L)
    NSm1 = num_slices - 1
    slice_items = build_slice_items(num_items, NSm1)

    log_seqs = jax.random.randint(k1, (B, L), 0, num_items + 1)      # 0 = padding
    targets = jax.random.randint(k2, (B, 1), 1, num_items + 1)
    negatives = jax.random.randint(k3, (B, 1), 1, num_items + 1)
    log_slices = jax.random.randint(k4, (B, L), 0, NSm1)
    tgt_slices = jax.random.randint(k5, (B, 1), 0, NSm1)
    trends_item = jax.random.normal(k6, (num_slices, T, E), jnp.float32)
    comm_size = jax.random.uniform(k7, (num_slices, T), jnp.float32) * 10.0 + 1.0
    trends_num = jnp.zeros((num_slices,), jnp.float32)               # unused by forward

    loss = pure_sasrec_forward(params, slice_items, trends_num, trends_item,
                               log_seqs, targets, negatives, log_slices,
                               tgt_slices, comm_size, scale)
    jax.block_until_ready(loss)
    print("KERNEL_OK")
</pallas_src>

<mosaic_0001>
module attributes {stable_mosaic.version = 11 : i64} {
  func.func @_fused_kernel(%arg0: i32, %arg1: memref<2x8x32xf32, #tpu.memory_space<vmem>>, %arg2: memref<2x8xf32, #tpu.memory_space<vmem>>, %arg3: memref<2x32xf32, #tpu.memory_space<vmem>>, %arg4: memref<2x32xf32, #tpu.memory_space<vmem>>, %arg5: memref<2x5x32xf32, #tpu.memory_space<vmem>>, %arg6: memref<2x5xf32, #tpu.memory_space<vmem>>, %arg7: memref<8x32xf32, #tpu.memory_space<vmem>>, %arg8: memref<1x32xf32, #tpu.memory_space<vmem>>, %arg9: memref<1x32xf32, #tpu.memory_space<vmem>>, %arg10: memref<32x32xf32, #tpu.memory_space<vmem>>, %arg11: memref<1x32xf32, #tpu.memory_space<vmem>>, %arg12: memref<32x32xbf16, #tpu.memory_space<vmem>>, %arg13: memref<1x32xf32, #tpu.memory_space<vmem>>, %arg14: memref<32x32xbf16, #tpu.memory_space<vmem>>, %arg15: memref<1x32xf32, #tpu.memory_space<vmem>>, %arg16: memref<32x32xf32, #tpu.memory_space<vmem>>, %arg17: memref<1x32xf32, #tpu.memory_space<vmem>>, %arg18: memref<1x32xf32, #tpu.memory_space<vmem>>, %arg19: memref<1x32xf32, #tpu.memory_space<vmem>>, %arg20: memref<32x32xf32, #tpu.memory_space<vmem>>, %arg21: memref<1x32xf32, #tpu.memory_space<vmem>>, %arg22: memref<32x32xf32, #tpu.memory_space<vmem>>, %arg23: memref<1x32xf32, #tpu.memory_space<vmem>>, %arg24: memref<1x32xf32, #tpu.memory_space<vmem>>, %arg25: memref<1x32xf32, #tpu.memory_space<vmem>>, %arg26: memref<32x32xf32, #tpu.memory_space<vmem>>, %arg27: memref<1x32xf32, #tpu.memory_space<vmem>>, %arg28: memref<32x32xf32, #tpu.memory_space<vmem>>, %arg29: memref<1x32xf32, #tpu.memory_space<vmem>>, %arg30: memref<1x2xf32, #tpu.memory_space<vmem>>) attributes {dimension_semantics = [#tpu.dimension_semantics<parallel>], iteration_bounds = array<i64: 1>, scalar_prefetch = 0 : i64, scratch_operands = 0 : i64, tpu.core_type = #tpu.core_type<tc>, window_params = [{transform_indices = @transform_0, window_bounds = array<i64: 2, 8, 32>}, {transform_indices = @transform_1, window_bounds = array<i64: 2, 8>}, {transform_indices = @transform_2, window_bounds = array<i64: 2, 32>}, {transform_indices = @transform_3, window_bounds = array<i64: 2, 32>}, {transform_indices = @transform_4, window_bounds = array<i64: 2, 5, 32>}, {transform_indices = @transform_5, window_bounds = array<i64: 2, 5>}, {pipeline_mode = #tpu.pipeline_mode<synchronous>, transform_indices = @transform_6, window_bounds = array<i64: 8, 32>}, {pipeline_mode = #tpu.pipeline_mode<synchronous>, transform_indices = @transform_7, window_bounds = array<i64: 1, 32>}, {pipeline_mode = #tpu.pipeline_mode<synchronous>, transform_indices = @transform_8, window_bounds = array<i64: 1, 32>}, {pipeline_mode = #tpu.pipeline_mode<synchronous>, transform_indices = @transform_9, window_bounds = array<i64: 32, 32>}, {pipeline_mode = #tpu.pipeline_mode<synchronous>, transform_indices = @transform_10, window_bounds = array<i64: 1, 32>}, {pipeline_mode = #tpu.pipeline_mode<synchronous>, transform_indices = @transform_11, window_bounds = array<i64: 32, 32>}, {pipeline_mode = #tpu.pipeline_mode<synchronous>, transform_indices = @transform_12, window_bounds = array<i64: 1, 32>}, {pipeline_mode = #tpu.pipeline_mode<synchronous>, transform_indices = @transform_13, window_bounds = array<i64: 32, 32>}, {pipeline_mode = #tpu.pipeline_mode<synchronous>, transform_indices = @transform_14, window_bounds = array<i64: 1, 32>}, {pipeline_mode = #tpu.pipeline_mode<synchronous>, transform_indices = @transform_15, window_bounds = array<i64: 32, 32>}, {pipeline_mode = #tpu.pipeline_mode<synchronous>, transform_indices = @transform_16, window_bounds = array<i64: 1, 32>}, {pipeline_mode = #tpu.pipeline_mode<synchronous>, transform_indices = @transform_17, window_bounds = array<i64: 1, 32>}, {pipeline_mode = #tpu.pipeline_mode<synchronous>, transform_indices = @transform_18, window_bounds = array<i64: 1, 32>}, {pipeline_mode = #tpu.pipeline_mode<synchronous>, transform_indices = @transform_19, window_bounds = array<i64: 32, 32>}, {pipeline_mode = #tpu.pipeline_mode<synchronous>, transform_indices = @transform_20, window_bounds = array<i64: 1, 32>}, {pipeline_mode = #tpu.pipeline_mode<synchronous>, transform_indices = @transform_21, window_bounds = array<i64: 32, 32>}, {pipeline_mode = #tpu.pipeline_mode<synchronous>, transform_indices = @transform_22, window_bounds = array<i64: 1, 32>}, {pipeline_mode = #tpu.pipeline_mode<synchronous>, transform_indices = @transform_23, window_bounds = array<i64: 1, 32>}, {pipeline_mode = #tpu.pipeline_mode<synchronous>, transform_indices = @transform_24, window_bounds = array<i64: 1, 32>}, {pipeline_mode = #tpu.pipeline_mode<synchronous>, transform_indices = @transform_25, window_bounds = array<i64: 32, 32>}, {pipeline_mode = #tpu.pipeline_mode<synchronous>, transform_indices = @transform_26, window_bounds = array<i64: 1, 32>}, {pipeline_mode = #tpu.pipeline_mode<synchronous>, transform_indices = @transform_27, window_bounds = array<i64: 32, 32>}, {pipeline_mode = #tpu.pipeline_mode<synchronous>, transform_indices = @transform_28, window_bounds = array<i64: 1, 32>}, {transform_indices = @transform_29, window_bounds = array<i64: 1, 2>}]} {
    %c0 = arith.constant 0 : index
    %c0_0 = arith.constant 0 : index
    %0 = vector.load %arg2[%c0, %c0_0] : memref<2x8xf32, #tpu.memory_space<vmem>>, vector<2x8xf32>
    %c0_1 = arith.constant 0 : index
    %c0_2 = arith.constant 0 : index
    %c0_3 = arith.constant 0 : index
    %1 = vector.load %arg1[%c0_1, %c0_2, %c0_3] : memref<2x8x32xf32, #tpu.memory_space<vmem>>, vector<2x8x32xf32>
    %cst = arith.constant 5.65685415 : f32
    %2 = vector.broadcast %cst : f32 to vector<2x8x32xf32>
    %3 = arith.mulf %1, %2 : vector<2x8x32xf32>
    %c0_4 = arith.constant 0 : index
    %c0_5 = arith.constant 0 : index
    %4 = vector.load %arg7[%c0_4, %c0_5] : memref<8x32xf32, #tpu.memory_space<vmem>>, vector<8x32xf32>
    %5 = vector.shape_cast %4 : vector<8x32xf32> to vector<1x8x32xf32>
    %6 = vector.broadcast %5 : vector<1x8x32xf32> to vector<2x8x32xf32>
    %7 = arith.addf %3, %6 : vector<2x8x32xf32>
    %8 = vector.shape_cast %0 : vector<2x8xf32> to vector<2x8x1xf32>
    %9 = vector.broadcast %8 : vector<2x8x1xf32> to vector<2x8x32xf32>
    %10 = arith.mulf %7, %9 : vector<2x8x32xf32>
    %11 = vector.extract_strided_slice %10 {offsets = [0, 7, 0], sizes = [2, 1, 32], strides = [1, 1, 1]} : vector<2x8x32xf32> to vector<2x1x32xf32>
    %12 = vector.shape_cast %11 : vector<2x1x32xf32> to vector<2x32xf32>
    %cst_6 = arith.constant dense<0.000000e+00> : vector<2xf32>
    %13 = vector.multi_reduction <add>, %12, %cst_6 [1] : vector<2x32xf32> to vector<2xf32>
    %14 = vector.shape_cast %13 : vector<2xf32> to vector<2x1xf32>
    %cst_7 = arith.constant 3.200000e+01 : f32
    %15 = vector.broadcast %cst_7 : f32 to vector<2x1xf32>
    %16 = arith.divf %14, %15 : vector<2x1xf32>
    %17 = vector.broadcast %16 : vector<2x1xf32> to vector<2x32xf32>
    %18 = arith.subf %12, %17 : vector<2x32xf32>
    %19 = arith.mulf %18, %18 : vector<2x32xf32>
    %cst_8 = arith.constant dense<0.000000e+00> : vector<2xf32>
    %20 = vector.multi_reduction <add>, %19, %cst_8 [1] : vector<2x32xf32> to vector<2xf32>
    %21 = vector.shape_cast %20 : vector<2xf32> to vector<2x1xf32>
    %cst_9 = arith.constant 3.200000e+01 : f32
    %22 = vector.broadcast %cst_9 : f32 to vector<2x1xf32>
    %23 = arith.divf %21, %22 : vector<2x1xf32>
    %24 = vector.broadcast %16 : vector<2x1xf32> to vector<2x32xf32>
    %25 = arith.subf %12, %24 : vector<2x32xf32>
    %cst_10 = arith.constant 9.99999993E-9 : f32
    %26 = vector.broadcast %cst_10 : f32 to vector<2x1xf32>
    %27 = arith.addf %23, %26 : vector<2x1xf32>
    %28 = math.rsqrt %27 : vector<2x1xf32>
    %29 = vector.broadcast %28 : vector<2x1xf32> to vector<2x32xf32>
    %30 = arith.mulf %25, %29 : vector<2x32xf32>
    %c0_11 = arith.constant 0 : index
    %c0_12 = arith.constant 0 : index
    %31 = vector.load %arg8[%c0_11, %c0_12] : memref<1x32xf32, #tpu.memory_space<vmem>>, vector<1x32xf32>
    %32 = vector.broadcast %31 : vector<1x32xf32> to vector<2x32xf32>
    %33 = arith.mulf %30, %32 : vector<2x32xf32>
    %c0_13 = arith.constant 0 : index
    %c0_14 = arith.constant 0 : index
    %34 = vector.load %arg9[%c0_13, %c0_14] : memref<1x32xf32, #tpu.memory_space<vmem>>, vector<1x32xf32>
    %35 = vector.broadcast %34 : vector<1x32xf32> to vector<2x32xf32>
    %36 = arith.addf %33, %35 : vector<2x32xf32>
    %c0_15 = arith.constant 0 : index
    %c0_16 = arith.constant 0 : index
    %37 = vector.load %arg10[%c0_15, %c0_16] : memref<32x32xf32, #tpu.memory_space<vmem>>, vector<32x32xf32>
    %cst_17 = arith.constant dense<0.000000e+00> : vector<2x32xf32>
    %38 = tpu.matmul %36, %37, %cst_17 {dimension_numbers = #tpu.dot_dimension_numbers<[1], [0], [0], [1], [0, 0, 1, 1], [], []>} : vector<2x32xf32>, vector<32x32xf32>, vector<2x32xf32> -> vector<2x32xf32>
    %c0_18 = arith.constant 0 : index
    %c0_19 = arith.constant 0 : index
    %39 = vector.load %arg11[%c0_18, %c0_19] : memref<1x32xf32, #tpu.memory_space<vmem>>, vector<1x32xf32>
    %40 = vector.broadcast %39 : vector<1x32xf32> to vector<2x32xf32>
    %41 = arith.addf %38, %40 : vector<2x32xf32>
    %42 = vector.shape_cast %10 : vector<2x8x32xf32> to vector<16x32xf32>
    %43 = arith.truncf %42 : vector<16x32xf32> to vector<16x32xbf16>
    %c0_20 = arith.constant 0 : index
    %c0_21 = arith.constant 0 : index
    %44 = vector.load %arg12[%c0_20, %c0_21] : memref<32x32xbf16, #tpu.memory_space<vmem>>, vector<32x32xbf16>
    %cst_22 = arith.constant dense<0.000000e+00> : vector<16x32xf32>
    %45 = tpu.matmul %43, %44, %cst_22 {dimension_numbers = #tpu.dot_dimension_numbers<[1], [0], [0], [1], [0, 0, 1, 1], [], []>} : vector<16x32xbf16>, vector<32x32xbf16>, vector<16x32xf32> -> vector<16x32xf32>
    %c0_23 = arith.constant 0 : index
    %c0_24 = arith.constant 0 : index
    %46 = vector.load %arg13[%c0_23, %c0_24] : memref<1x32xf32, #tpu.memory_space<vmem>>, vector<1x32xf32>
    %47 = vector.broadcast %46 : vector<1x32xf32> to vector<16x32xf32>
    %48 = arith.addf %45, %47 : vector<16x32xf32>
    %49 = vector.shape_cast %48 : vector<16x32xf32> to vector<2x8x32xf32>
    %c0_25 = arith.constant 0 : index
    %c0_26 = arith.constant 0 : index
    %50 = vector.load %arg14[%c0_25, %c0_26] : memref<32x32xbf16, #tpu.memory_space<vmem>>, vector<32x32xbf16>
    %cst_27 = arith.constant dense<0.000000e+00> : vector<16x32xf32>
    %51 = tpu.matmul %43, %50, %cst_27 {dimension_numbers = #tpu.dot_dimension_numbers<[1], [0], [0], [1], [0, 0, 1, 1], [], []>} : vector<16x32xbf16>, vector<32x32xbf16>, vector<16x32xf32> -> vector<16x32xf32>
    %c0_28 = arith.constant 0 : index
    %c0_29 = arith.constant 0 : index
    %52 = vector.load %arg15[%c0_28, %c0_29] : memref<1x32xf32, #tpu.memory_space<vmem>>, vector<1x32xf32>
    %53 = vector.broadcast %52 : vector<1x32xf32> to vector<16x32xf32>
    %54 = arith.addf %51, %53 : vector<16x32xf32>
    %55 = vector.shape_cast %54 : vector<16x32xf32> to vector<2x8x32xf32>
    %56 = vector.shape_cast %41 : vector<2x32xf32> to vector<2x1x32xf32>
    %57 = vector.broadcast %56 : vector<2x1x32xf32> to vector<2x8x32xf32>
    %58 = arith.mulf %57, %49 : vector<2x8x32xf32>
    %cst_30 = arith.constant dense<0.000000e+00> : vector<2x8xf32>
    %59 = vector.multi_reduction <add>, %58, %cst_30 [2] : vector<2x8x32xf32> to vector<2x8xf32>
    %cst_31 = arith.constant 0.176776692 : f32
    %60 = vector.broadcast %cst_31 : f32 to vector<2x8xf32>
    %61 = arith.mulf %59, %60 : vector<2x8xf32>
    %cst_32 = arith.constant dense<0xFF800000> : vector<2xf32>
    %62 = vector.multi_reduction <maximumf>, %61, %cst_32 [1] : vector<2x8xf32> to vector<2xf32>
    %cst_33 = arith.constant 0xFF800000 : f32
    %63 = vector.broadcast %cst_33 : f32 to vector<2xf32>
    %64 = arith.maximumf %63, %62 : vector<2xf32>
    %65 = vector.shape_cast %64 : vector<2xf32> to vector<2x1xf32>
    %66 = vector.broadcast %65 : vector<2x1xf32> to vector<2x8xf32>
    %67 = arith.subf %61, %66 : vector<2x8xf32>
    %68 = math.exp %67 : vector<2x8xf32>
    %cst_34 = arith.constant dense<0.000000e+00> : vector<2xf32>
    %69 = vector.multi_reduction <add>, %68, %cst_34 [1] : vector<2x8xf32> to vector<2xf32>
    %70 = vector.shape_cast %69 : vector<2xf32> to vector<2x1xf32>
    %71 = vector.broadcast %70 : vector<2x1xf32> to vector<2x8xf32>
    %72 = arith.divf %68, %71 : vector<2x8xf32>
    %73 = vector.shape_cast %72 : vector<2x8xf32> to vector<2x8x1xf32>
    %74 = vector.broadcast %73 : vector<2x8x1xf32> to vector<2x8x32xf32>
    %75 = arith.mulf %74, %55 : vector<2x8x32xf32>
    %cst_35 = arith.constant dense<0.000000e+00> : vector<2x32xf32>
    %76 = vector.multi_reduction <add>, %75, %cst_35 [1] : vector<2x8x32xf32> to vector<2x32xf32>
    %c0_36 = arith.constant 0 : index
    %c0_37 = arith.constant 0 : index
    %77 = vector.load %arg16[%c0_36, %c0_37] : memref<32x32xf32, #tpu.memory_space<vmem>>, vector<32x32xf32>
    %cst_38 = arith.constant dense<0.000000e+00> : vector<2x32xf32>
    %78 = tpu.matmul %76, %77, %cst_38 {dimension_numbers = #tpu.dot_dimension_numbers<[1], [0], [0], [1], [0, 0, 1, 1], [], []>} : vector<2x32xf32>, vector<32x32xf32>, vector<2x32xf32> -> vector<2x32xf32>
    %c0_39 = arith.constant 0 : index
    %c0_40 = arith.constant 0 : index
    %79 = vector.load %arg17[%c0_39, %c0_40] : memref<1x32xf32, #tpu.memory_space<vmem>>, vector<1x32xf32>
    %80 = vector.broadcast %79 : vector<1x32xf32> to vector<2x32xf32>
    %81 = arith.addf %78, %80 : vector<2x32xf32>
    %82 = arith.addf %36, %81 : vector<2x32xf32>
    %cst_41 = arith.constant dense<0.000000e+00> : vector<2xf32>
    %83 = vector.multi_reduction <add>, %82, %cst_41 [1] : vector<2x32xf32> to vector<2xf32>
    %84 = vector.shape_cast %83 : vector<2xf32> to vector<2x1xf32>
    %cst_42 = arith.constant 3.200000e+01 : f32
    %85 = vector.broadcast %cst_42 : f32 to vector<2x1xf32>
    %86 = arith.divf %84, %85 : vector<2x1xf32>
    %87 = vector.broadcast %86 : vector<2x1xf32> to vector<2x32xf32>
    %88 = arith.subf %82, %87 : vector<2x32xf32>
    %89 = arith.mulf %88, %88 : vector<2x32xf32>
    %cst_43 = arith.constant dense<0.000000e+00> : vector<2xf32>
    %90 = vector.multi_reduction <add>, %89, %cst_43 [1] : vector<2x32xf32> to vector<2xf32>
    %91 = vector.shape_cast %90 : vector<2xf32> to vector<2x1xf32>
    %cst_44 = arith.constant 3.200000e+01 : f32
    %92 = vector.broadcast %cst_44 : f32 to vector<2x1xf32>
    %93 = arith.divf %91, %92 : vector<2x1xf32>
    %94 = vector.broadcast %86 : vector<2x1xf32> to vector<2x32xf32>
    %95 = arith.subf %82, %94 : vector<2x32xf32>
    %cst_45 = arith.constant 9.99999993E-9 : f32
    %96 = vector.broadcast %cst_45 : f32 to vector<2x1xf32>
    %97 = arith.addf %93, %96 : vector<2x1xf32>
    %98 = math.rsqrt %97 : vector<2x1xf32>
    %99 = vector.broadcast %98 : vector<2x1xf32> to vector<2x32xf32>
    %100 = arith.mulf %95, %99 : vector<2x32xf32>
    %c0_46 = arith.constant 0 : index
    %c0_47 = arith.constant 0 : index
    %101 = vector.load %arg18[%c0_46, %c0_47] : memref<1x32xf32, #tpu.memory_space<vmem>>, vector<1x32xf32>
    %102 = vector.broadcast %101 : vector<1x32xf32> to vector<2x32xf32>
    %103 = arith.mulf %100, %102 : vector<2x32xf32>
    %c0_48 = arith.constant 0 : index
    %c0_49 = arith.constant 0 : index
    %104 = vector.load %arg19[%c0_48, %c0_49] : memref<1x32xf32, #tpu.memory_space<vmem>>, vector<1x32xf32>
    %105 = vector.broadcast %104 : vector<1x32xf32> to vector<2x32xf32>
    %106 = arith.addf %103, %105 : vector<2x32xf32>
    %c0_50 = arith.constant 0 : index
    %c0_51 = arith.constant 0 : index
    %107 = vector.load %arg20[%c0_50, %c0_51] : memref<32x32xf32, #tpu.memory_space<vmem>>, vector<32x32xf32>
    %cst_52 = arith.constant dense<0.000000e+00> : vector<2x32xf32>
    %108 = tpu.matmul %106, %107, %cst_52 {dimension_numbers = #tpu.dot_dimension_numbers<[1], [0], [0], [1], [0, 0, 1, 1], [], []>} : vector<2x32xf32>, vector<32x32xf32>, vector<2x32xf32> -> vector<2x32xf32>
    %c0_53 = arith.constant 0 : index
    %c0_54 = arith.constant 0 : index
    %109 = vector.load %arg21[%c0_53, %c0_54] : memref<1x32xf32, #tpu.memory_space<vmem>>, vector<1x32xf32>
    %110 = vector.broadcast %109 : vector<1x32xf32> to vector<2x32xf32>
    %111 = arith.addf %108, %110 : vector<2x32xf32>
    %cst_55 = arith.constant 0.000000e+00 : f32
    %112 = vector.broadcast %cst_55 : f32 to vector<2x32xf32>
    %113 = arith.maximumf %111, %112 : vector<2x32xf32>
    %c0_56 = arith.constant 0 : index
    %c0_57 = arith.constant 0 : index
    %114 = vector.load %arg22[%c0_56, %c0_57] : memref<32x32xf32, #tpu.memory_space<vmem>>, vector<32x32xf32>
    %cst_58 = arith.constant dense<0.000000e+00> : vector<2x32xf32>
    %115 = tpu.matmul %113, %114, %cst_58 {dimension_numbers = #tpu.dot_dimension_numbers<[1], [0], [0], [1], [0, 0, 1, 1], [], []>} : vector<2x32xf32>, vector<32x32xf32>, vector<2x32xf32> -> vector<2x32xf32>
    %c0_59 = arith.constant 0 : index
    %c0_60 = arith.constant 0 : index
    %116 = vector.load %arg23[%c0_59, %c0_60] : memref<1x32xf32, #tpu.memory_space<vmem>>, vector<1x32xf32>
    %117 = vector.broadcast %116 : vector<1x32xf32> to vector<2x32xf32>
    %118 = arith.addf %115, %117 : vector<2x32xf32>
    %119 = arith.addf %118, %106 : vector<2x32xf32>
    %120 = vector.extract_strided_slice %0 {offsets = [0, 7], sizes = [2, 1], strides = [1, 1]} : vector<2x8xf32> to vector<2x1xf32>
    %121 = vector.broadcast %120 : vector<2x1xf32> to vector<2x32xf32>
    %122 = arith.mulf %119, %121 : vector<2x32xf32>
    %cst_61 = arith.constant dense<0.000000e+00> : vector<2xf32>
    %123 = vector.multi_reduction <add>, %122, %cst_61 [1] : vector<2x32xf32> to vector<2xf32>
    %124 = vector.shape_cast %123 : vector<2xf32> to vector<2x1xf32>
    %cst_62 = arith.constant 3.200000e+01 : f32
    %125 = vector.broadcast %cst_62 : f32 to vector<2x1xf32>
    %126 = arith.divf %124, %125 : vector<2x1xf32>
    %127 = vector.broadcast %126 : vector<2x1xf32> to vector<2x32xf32>
    %128 = arith.subf %122, %127 : vector<2x32xf32>
    %129 = arith.mulf %128, %128 : vector<2x32xf32>
    %cst_63 = arith.constant dense<0.000000e+00> : vector<2xf32>
    %130 = vector.multi_reduction <add>, %129, %cst_63 [1] : vector<2x32xf32> to vector<2xf32>
    %131 = vector.shape_cast %130 : vector<2xf32> to vector<2x1xf32>
    %cst_64 = arith.constant 3.200000e+01 : f32
    %132 = vector.broadcast %cst_64 : f32 to vector<2x1xf32>
    %133 = arith.divf %131, %132 : vector<2x1xf32>
    %134 = vector.broadcast %126 : vector<2x1xf32> to vector<2x32xf32>
    %135 = arith.subf %122, %134 : vector<2x32xf32>
    %cst_65 = arith.constant 9.99999993E-9 : f32
    %136 = vector.broadcast %cst_65 : f32 to vector<2x1xf32>
    %137 = arith.addf %133, %136 : vector<2x1xf32>
    %138 = math.rsqrt %137 : vector<2x1xf32>
    %139 = vector.broadcast %138 : vector<2x1xf32> to vector<2x32xf32>
    %140 = arith.mulf %135, %139 : vector<2x32xf32>
    %c0_66 = arith.constant 0 : index
    %c0_67 = arith.constant 0 : index
    %141 = vector.load %arg24[%c0_66, %c0_67] : memref<1x32xf32, #tpu.memory_space<vmem>>, vector<1x32xf32>
    %142 = vector.broadcast %141 : vector<1x32xf32> to vector<2x32xf32>
    %143 = arith.mulf %140, %142 : vector<2x32xf32>
    %c0_68 = arith.constant 0 : index
    %c0_69 = arith.constant 0 : index
    %144 = vector.load %arg25[%c0_68, %c0_69] : memref<1x32xf32, #tpu.memory_space<vmem>>, vector<1x32xf32>
    %145 = vector.broadcast %144 : vector<1x32xf32> to vector<2x32xf32>
    %146 = arith.addf %143, %145 : vector<2x32xf32>
    %c0_70 = arith.constant 0 : index
    %c0_71 = arith.constant 0 : index
    %147 = vector.load %arg3[%c0_70, %c0_71] : memref<2x32xf32, #tpu.memory_space<vmem>>, vector<2x32xf32>
    %c0_72 = arith.constant 0 : index
    %c0_73 = arith.constant 0 : index
    %148 = vector.load %arg4[%c0_72, %c0_73] : memref<2x32xf32, #tpu.memory_space<vmem>>, vector<2x32xf32>
    %c0_74 = arith.constant 0 : index
    %c0_75 = arith.constant 0 : index
    %c0_76 = arith.constant 0 : index
    %149 = vector.load %arg5[%c0_74, %c0_75, %c0_76] : memref<2x5x32xf32, #tpu.memory_space<vmem>>, vector<2x5x32xf32>
    %c0_77 = arith.constant 0 : index
    %c0_78 = arith.constant 0 : index
    %150 = vector.load %arg6[%c0_77, %c0_78] : memref<2x5xf32, #tpu.memory_space<vmem>>, vector<2x5xf32>
    %151 = vector.shape_cast %147 : vector<2x32xf32> to vector<1x2x32xf32>
    %152 = vector.shape_cast %148 : vector<2x32xf32> to vector<1x2x32xf32>
    %153 = tpu.concatenate %151, %152 in 0 : vector<1x2x32xf32>, vector<1x2x32xf32> -> vector<2x2x32xf32>
    %154 = vector.shape_cast %146 : vector<2x32xf32> to vector<1x2x32xf32>
    %155 = vector.broadcast %154 : vector<1x2x32xf32> to vector<2x2x32xf32>
    %156 = arith.mulf %155, %153 : vector<2x2x32xf32>
    %cst_79 = arith.constant dense<0.000000e+00> : vector<2x2xf32>
    %157 = vector.multi_reduction <add>, %156, %cst_79 [2] : vector<2x2x32xf32> to vector<2x2xf32>
    %158 = vector.shape_cast %153 : vector<2x2x32xf32> to vector<4x32xf32>
    %c0_80 = arith.constant 0 : index
    %c0_81 = arith.constant 0 : index
    %159 = vector.load %arg26[%c0_80, %c0_81] : memref<32x32xf32, #tpu.memory_space<vmem>>, vector<32x32xf32>
    %cst_82 = arith.constant dense<0.000000e+00> : vector<4x32xf32>
    %160 = tpu.matmul %158, %159, %cst_82 {dimension_numbers = #tpu.dot_dimension_numbers<[1], [0], [0], [1], [0, 0, 1, 1], [], []>} : vector<4x32xf32>, vector<32x32xf32>, vector<4x32xf32> -> vector<4x32xf32>
    %c0_83 = arith.constant 0 : index
    %c0_84 = arith.constant 0 : index
    %161 = vector.load %arg27[%c0_83, %c0_84] : memref<1x32xf32, #tpu.memory_space<vmem>>, vector<1x32xf32>
    %162 = vector.broadcast %161 : vector<1x32xf32> to vector<4x32xf32>
    %163 = arith.addf %160, %162 : vector<4x32xf32>
    %164 = vector.shape_cast %163 : vector<4x32xf32> to vector<2x2x32xf32>
    %165 = vector.shape_cast %149 : vector<2x5x32xf32> to vector<10x32xf32>
    %c0_85 = arith.constant 0 : index
    %c0_86 = arith.constant 0 : index
    %166 = vector.load %arg28[%c0_85, %c0_86] : memref<32x32xf32, #tpu.memory_space<vmem>>, vector<32x32xf32>
    %cst_87 = arith.constant dense<0.000000e+00> : vector<10x32xf32>
    %167 = tpu.matmul %165, %166, %cst_87 {dimension_numbers = #tpu.dot_dimension_numbers<[1], [0], [0], [1], [0, 0, 1, 1], [], []>} : vector<10x32xf32>, vector<32x32xf32>, vector<10x32xf32> -> vector<10x32xf32>
    %c0_88 = arith.constant 0 : index
    %c0_89 = arith.constant 0 : index
    %168 = vector.load %arg29[%c0_88, %c0_89] : memref<1x32xf32, #tpu.memory_space<vmem>>, vector<1x32xf32>
    %169 = vector.broadcast %168 : vector<1x32xf32> to vector<10x32xf32>
    %170 = arith.addf %167, %169 : vector<10x32xf32>
    %171 = vector.shape_cast %170 : vector<10x32xf32> to vector<2x5x32xf32>
    %172 = vector.shape_cast %150 : vector<2x5xf32> to vector<2x5x1xf32>
    %173 = vector.broadcast %172 : vector<2x5x1xf32> to vector<2x5x32xf32>
    %174 = arith.mulf %173, %149 : vector<2x5x32xf32>
    %175 = vector.shape_cast %164 : vector<2x2x32xf32> to vector<2x2x1x32xf32>
    %176 = vector.shape_cast %171 : vector<2x5x32xf32> to vector<1x2x5x32xf32>
    %177 = vector.broadcast %175 : vector<2x2x1x32xf32> to vector<2x2x5x32xf32>
    %178 = vector.broadcast %176 : vector<1x2x5x32xf32> to vector<2x2x5x32xf32>
    %179 = arith.mulf %177, %178 : vector<2x2x5x32xf32>
    %cst_90 = arith.constant dense<0.000000e+00> : vector<2x2x5xf32>
    %180 = vector.multi_reduction <add>, %179, %cst_90 [3] : vector<2x2x5x32xf32> to vector<2x2x5xf32>
    %cst_91 = arith.constant 2.500000e-01 : f32
    %181 = vector.broadcast %cst_91 : f32 to vector<2x2x5xf32>
    %182 = arith.mulf %180, %181 : vector<2x2x5xf32>
    %cst_92 = arith.constant dense<0xFF800000> : vector<2x2xf32>
    %183 = vector.multi_reduction <maximumf>, %182, %cst_92 [2] : vector<2x2x5xf32> to vector<2x2xf32>
    %cst_93 = arith.constant 0xFF800000 : f32
    %184 = vector.broadcast %cst_93 : f32 to vector<2x2xf32>
    %185 = arith.maximumf %184, %183 : vector<2x2xf32>
    %186 = vector.shape_cast %185 : vector<2x2xf32> to vector<2x2x1xf32>
    %187 = vector.broadcast %186 : vector<2x2x1xf32> to vector<2x2x5xf32>
    %188 = arith.subf %182, %187 : vector<2x2x5xf32>
    %189 = math.exp %188 : vector<2x2x5xf32>
    %cst_94 = arith.constant dense<0.000000e+00> : vector<2x2xf32>
    %190 = vector.multi_reduction <add>, %189, %cst_94 [2] : vector<2x2x5xf32> to vector<2x2xf32>
    %191 = vector.shape_cast %190 : vector<2x2xf32> to vector<2x2x1xf32>
    %192 = vector.broadcast %191 : vector<2x2x1xf32> to vector<2x2x5xf32>
    %193 = arith.divf %189, %192 : vector<2x2x5xf32>
    %194 = vector.shape_cast %193 : vector<2x2x5xf32> to vector<2x2x5x1xf32>
    %195 = vector.shape_cast %174 : vector<2x5x32xf32> to vector<1x2x5x32xf32>
    %196 = vector.broadcast %194 : vector<2x2x5x1xf32> to vector<2x2x5x32xf32>
    %197 = vector.broadcast %195 : vector<1x2x5x32xf32> to vector<2x2x5x32xf32>
    %198 = arith.mulf %196, %197 : vector<2x2x5x32xf32>
    %cst_95 = arith.constant dense<0.000000e+00> : vector<2x2x32xf32>
    %199 = vector.multi_reduction <add>, %198, %cst_95 [2] : vector<2x2x5x32xf32> to vector<2x2x32xf32>
    %200 = arith.mulf %153, %199 : vector<2x2x32xf32>
    %cst_96 = arith.constant dense<0.000000e+00> : vector<2x2xf32>
    %201 = vector.multi_reduction <add>, %200, %cst_96 [2] : vector<2x2x32xf32> to vector<2x2xf32>
    %202 = arith.mulf %153, %153 : vector<2x2x32xf32>
    %cst_97 = arith.constant dense<0.000000e+00> : vector<2x2xf32>
    %203 = vector.multi_reduction <add>, %202, %cst_97 [2] : vector<2x2x32xf32> to vector<2x2xf32>
    %204 = math.sqrt %203 : vector<2x2xf32>
    %cst_98 = arith.constant 9.99999993E-9 : f32
    %205 = vector.broadcast %cst_98 : f32 to vector<2x2xf32>
    %206 = arith.maximumf %204, %205 : vector<2x2xf32>
    %207 = arith.mulf %199, %199 : vector<2x2x32xf32>
    %cst_99 = arith.constant dense<0.000000e+00> : vector<2x2xf32>
    %208 = vector.multi_reduction <add>, %207, %cst_99 [2] : vector<2x2x32xf32> to vector<2x2xf32>
    %209 = math.sqrt %208 : vector<2x2xf32>
    %cst_100 = arith.constant 9.99999993E-9 : f32
    %210 = vector.broadcast %cst_100 : f32 to vector<2x2xf32>
    %211 = arith.maximumf %209, %210 : vector<2x2xf32>
    %212 = arith.mulf %206, %211 : vector<2x2xf32>
    %213 = arith.divf %201, %212 : vector<2x2xf32>
    %214 = arith.negf %213 : vector<2x2xf32>
    %215 = math.exp %214 : vector<2x2xf32>
    %cst_101 = arith.constant 1.000000e+00 : f32
    %216 = vector.broadcast %cst_101 : f32 to vector<2x2xf32>
    %217 = arith.addf %216, %215 : vector<2x2xf32>
    %218 = arith.divf %216, %217 : vector<2x2xf32>
    %cst_102 = arith.constant 0.000000e+00 : f32
    %219 = vector.broadcast %cst_102 : f32 to vector<2x2xf32>
    %220 = arith.cmpf ogt, %157, %219 : vector<2x2xf32>
    %cst_103 = arith.constant 1.000000e+00 : f32
    %221 = vector.broadcast %cst_103 : f32 to vector<2x2xf32>
    %222 = arith.addf %157, %221 : vector<2x2xf32>
    %cst_104 = arith.constant 0.000000e+00 : f32
    %223 = vector.broadcast %cst_104 : f32 to vector<2x2xf32>
    %224 = arith.minimumf %157, %223 : vector<2x2xf32>
    %225 = math.exp %224 : vector<2x2xf32>
    %226 = arith.select %220, %222, %225 : vector<2x2xi1>, vector<2x2xf32>
    %227 = arith.mulf %226, %218 : vector<2x2xf32>
    %228 = vector.extract_strided_slice %227 {offsets = [0, 0], sizes = [1, 2], strides = [1, 1]} : vector<2x2xf32> to vector<1x2xf32>
    %229 = vector.shape_cast %228 : vector<1x2xf32> to vector<2xf32>
    %230 = vector.extract_strided_slice %227 {offsets = [1, 0], sizes = [1, 2], strides = [1, 1]} : vector<2x2xf32> to vector<1x2xf32>
    %231 = vector.shape_cast %230 : vector<1x2xf32> to vector<2xf32>
    %232 = arith.subf %229, %231 : vector<2xf32>
    %233 = arith.negf %232 : vector<2xf32>
    %234 = math.exp %233 : vector<2xf32>
    %cst_105 = arith.constant 1.000000e+00 : f32
    %235 = vector.broadcast %cst_105 : f32 to vector<2xf32>
    %236 = arith.addf %235, %234 : vector<2xf32>
    %237 = arith.divf %235, %236 : vector<2xf32>
    %cst_106 = arith.constant 1.000000e-10 : f32
    %238 = vector.broadcast %cst_106 : f32 to vector<2xf32>
    %239 = arith.addf %237, %238 : vector<2xf32>
    %240 = math.log %239 : vector<2xf32>
    %241 = vector.shape_cast %240 : vector<2xf32> to vector<1x2xf32>
    %c0_107 = arith.constant 0 : index
    %c0_108 = arith.constant 0 : index
    %242 = vector.load %arg30[%c0_107, %c0_108] : memref<1x2xf32, #tpu.memory_space<vmem>>, vector<1x2xf32>
    tpu.vector_store %arg30[%c0_107, %c0_108], %241 {strides = array<i32>} : memref<1x2xf32, #tpu.memory_space<vmem>>, vector<1x2xf32>,
    return
  }
  func.func @transform_0(%arg0: i32) -> (i32, i32, i32) {
    %c0_i32 = arith.constant 0 : i32
    %c0_i32_0 = arith.constant 0 : i32
    %c0_i32_1 = arith.constant 0 : i32
    return %arg0, %c0_i32, %c0_i32_0 : i32, i32, i32
  }
  func.func @transform_1(%arg0: i32) -> (i32, i32) {
    %c0_i32 = arith.constant 0 : i32
    %c0_i32_0 = arith.constant 0 : i32
    return %arg0, %c0_i32 : i32, i32
  }
  func.func @transform_2(%arg0: i32) -> (i32, i32) {
    %c0_i32 = arith.constant 0 : i32
    %c0_i32_0 = arith.constant 0 : i32
    return %arg0, %c0_i32 : i32, i32
  }
  func.func @transform_3(%arg0: i32) -> (i32, i32) {
    %c0_i32 = arith.constant 0 : i32
    %c0_i32_0 = arith.constant 0 : i32
    return %arg0, %c0_i32 : i32, i32
  }
  func.func @transform_4(%arg0: i32) -> (i32, i32, i32) {
    %c0_i32 = arith.constant 0 : i32
    %c0_i32_0 = arith.constant 0 : i32
    %c0_i32_1 = arith.constant 0 : i32
    return %arg0, %c0_i32, %c0_i32_0 : i32, i32, i32
  }
  func.func @transform_5(%arg0: i32) -> (i32, i32) {
    %c0_i32 = arith.constant 0 : i32
    %c0_i32_0 = arith.constant 0 : i32
    return %arg0, %c0_i32 : i32, i32
  }
  func.func @transform_6(%arg0: i32) -> (i32, i32) {
    %c0_i32 = arith.constant 0 : i32
    %c0_i32_0 = arith.constant 0 : i32
    %c0_i32_1 = arith.constant 0 : i32
    return %c0_i32, %c0_i32_0 : i32, i32
  }
  func.func @transform_7(%arg0: i32) -> (i32, i32) {
    %c0_i32 = arith.constant 0 : i32
    %c0_i32_0 = arith.constant 0 : i32
    %c0_i32_1 = arith.constant 0 : i32
    return %c0_i32, %c0_i32_0 : i32, i32
  }
  func.func @transform_8(%arg0: i32) -> (i32, i32) {
    %c0_i32 = arith.constant 0 : i32
    %c0_i32_0 = arith.constant 0 : i32
    %c0_i32_1 = arith.constant 0 : i32
    return %c0_i32, %c0_i32_0 : i32, i32
  }
  func.func @transform_9(%arg0: i32) -> (i32, i32) {
    %c0_i32 = arith.constant 0 : i32
    %c0_i32_0 = arith.constant 0 : i32
    %c0_i32_1 = arith.constant 0 : i32
    return %c0_i32, %c0_i32_0 : i32, i32
  }
  func.func @transform_10(%arg0: i32) -> (i32, i32) {
    %c0_i32 = arith.constant 0 : i32
    %c0_i32_0 = arith.constant 0 : i32
    %c0_i32_1 = arith.constant 0 : i32
    return %c0_i32, %c0_i32_0 : i32, i32
  }
  func.func @transform_11(%arg0: i32) -> (i32, i32) {
    %c0_i32 = arith.constant 0 : i32
    %c0_i32_0 = arith.constant 0 : i32
    %c0_i32_1 = arith.constant 0 : i32
    return %c0_i32, %c0_i32_0 : i32, i32
  }
  func.func @transform_12(%arg0: i32) -> (i32, i32) {
    %c0_i32 = arith.constant 0 : i32
    %c0_i32_0 = arith.constant 0 : i32
    %c0_i32_1 = arith.constant 0 : i32
    return %c0_i32, %c0_i32_0 : i32, i32
  }
  func.func @transform_13(%arg0: i32) -> (i32, i32) {
    %c0_i32 = arith.constant 0 : i32
    %c0_i32_0 = arith.constant 0 : i32
    %c0_i32_1 = arith.constant 0 : i32
    return %c0_i32, %c0_i32_0 : i32, i32
  }
  func.func @transform_14(%arg0: i32) -> (i32, i32) {
    %c0_i32 = arith.constant 0 : i32
    %c0_i32_0 = arith.constant 0 : i32
    %c0_i32_1 = arith.constant 0 : i32
    return %c0_i32, %c0_i32_0 : i32, i32
  }
  func.func @transform_15(%arg0: i32) -> (i32, i32) {
    %c0_i32 = arith.constant 0 : i32
    %c0_i32_0 = arith.constant 0 : i32
    %c0_i32_1 = arith.constant 0 : i32
    return %c0_i32, %c0_i32_0 : i32, i32
  }
  func.func @transform_16(%arg0: i32) -> (i32, i32) {
    %c0_i32 = arith.constant 0 : i32
    %c0_i32_0 = arith.constant 0 : i32
    %c0_i32_1 = arith.constant 0 : i32
    return %c0_i32, %c0_i32_0 : i32, i32
  }
  func.func @transform_17(%arg0: i32) -> (i32, i32) {
    %c0_i32 = arith.constant 0 : i32
    %c0_i32_0 = arith.constant 0 : i32
    %c0_i32_1 = arith.constant 0 : i32
    return %c0_i32, %c0_i32_0 : i32, i32
  }
  func.func @transform_18(%arg0: i32) -> (i32, i32) {
    %c0_i32 = arith.constant 0 : i32
    %c0_i32_0 = arith.constant 0 : i32
    %c0_i32_1 = arith.constant 0 : i32
    return %c0_i32, %c0_i32_0 : i32, i32
  }
  func.func @transform_19(%arg0: i32) -> (i32, i32) {
    %c0_i32 = arith.constant 0 : i32
    %c0_i32_0 = arith.constant 0 : i32
    %c0_i32_1 = arith.constant 0 : i32
    return %c0_i32, %c0_i32_0 : i32, i32
  }
  func.func @transform_20(%arg0: i32) -> (i32, i32) {
    %c0_i32 = arith.constant 0 : i32
    %c0_i32_0 = arith.constant 0 : i32
    %c0_i32_1 = arith.constant 0 : i32
    return %c0_i32, %c0_i32_0 : i32, i32
  }
  func.func @transform_21(%arg0: i32) -> (i32, i32) {
    %c0_i32 = arith.constant 0 : i32
    %c0_i32_0 = arith.constant 0 : i32
    %c0_i32_1 = arith.constant 0 : i32
    return %c0_i32, %c0_i32_0 : i32, i32
  }
  func.func @transform_22(%arg0: i32) -> (i32, i32) {
    %c0_i32 = arith.constant 0 : i32
    %c0_i32_0 = arith.constant 0 : i32
    %c0_i32_1 = arith.constant 0 : i32
    return %c0_i32, %c0_i32_0 : i32, i32
  }
  func.func @transform_23(%arg0: i32) -> (i32, i32) {
    %c0_i32 = arith.constant 0 : i32
    %c0_i32_0 = arith.constant 0 : i32
    %c0_i32_1 = arith.constant 0 : i32
    return %c0_i32, %c0_i32_0 : i32, i32
  }
  func.func @transform_24(%arg0: i32) -> (i32, i32) {
    %c0_i32 = arith.constant 0 : i32
    %c0_i32_0 = arith.constant 0 : i32
    %c0_i32_1 = arith.constant 0 : i32
    return %c0_i32, %c0_i32_0 : i32, i32
  }
  func.func @transform_25(%arg0: i32) -> (i32, i32) {
    %c0_i32 = arith.constant 0 : i32
    %c0_i32_0 = arith.constant 0 : i32
    %c0_i32_1 = arith.constant 0 : i32
    return %c0_i32, %c0_i32_0 : i32, i32
  }
  func.func @transform_26(%arg0: i32) -> (i32, i32) {
    %c0_i32 = arith.constant 0 : i32
    %c0_i32_0 = arith.constant 0 : i32
    %c0_i32_1 = arith.constant 0 : i32
    return %c0_i32, %c0_i32_0 : i32, i32
  }
  func.func @transform_27(%arg0: i32) -> (i32, i32) {
    %c0_i32 = arith.constant 0 : i32
    %c0_i32_0 = arith.constant 0 : i32
    %c0_i32_1 = arith.constant 0 : i32
    return %c0_i32, %c0_i32_0 : i32, i32
  }
  func.func @transform_28(%arg0: i32) -> (i32, i32) {
    %c0_i32 = arith.constant 0 : i32
    %c0_i32_0 = arith.constant 0 : i32
    %c0_i32_1 = arith.constant 0 : i32
    return %c0_i32, %c0_i32_0 : i32, i32
  }
  func.func @transform_29(%arg0: i32) -> (i32, i32) {
    %c0_i32 = arith.constant 0 : i32
    %c0_i32_0 = arith.constant 0 : i32
    return %c0_i32, %arg0 : i32, i32
  }
}

</mosaic_0001>

<bundles_post_ra>
// kernel: tpu_custom_call.1
= control target key start
LH: loop header
LB: loop body
LE: loop exit
PB: predicated region body
PF: predicated region fallthrough
CT: control target
= control target key end

     0   :  { %s3044_s6 = smov 1   ;;  %s3045_s10 = smov 2   ;;  %s3647_s0 = inlined_call_operand.smem [shape: u32[30], index: -1, kind: input, shape index: {}] }
   0x1   :  { %s3116_s5 = sld [smem:[%s3647_s0]]   ;;  %s3046_s14 = smov 3  }
   0x2   :  { %s3121_s9 = sld [smem:[%s3647_s0 + %s3044_s6]]   ;;  %s3047_s18 = smov 4  }
   0x3   :  { %s3126_s13 = sld [smem:[%s3647_s0 + %s3045_s10]]   ;;  %s3048_s22 = smov 5  }
   0x4   :  { %s3131_s17 = sld [smem:[%s3647_s0 + %s3046_s14]]   ;;  %s3049_s26 = smov 6  }
   0x5   :  { %s3136_s21 = sld [smem:[%s3647_s0 + %s3047_s18]]   ;;  %s3050_s30 = smov 7  }
   0x6   :  { %s3141_s25 = sld [smem:[%s3647_s0 + %s3048_s22]]   ;;  %s3051_s4 = smov 8  }
   0x7   :  { %s3146_s29 = sld [smem:[%s3647_s0 + %s3049_s26]]   ;;  %s3052_s10 = smov 9  }
   0x8   :  { %s3151_s3 = sld [smem:[%s3647_s0 + %s3050_s30]]   ;;  %s3053_s15 = smov 10  }
   0x9   :  { %s3156_s8 = sld [smem:[%s3647_s0 + %s3051_s4]]   ;;  %s3054_s20 = smov 11  }
   0xa   :  { %s3161_s14 = sld [smem:[%s3647_s0 + %s3052_s10]]   ;;  %s3055_s26 = smov 12  }
   0xb   :  { %3660 = sst [smem:[#allocation52_spill]] %s3136_s21  ;;  %s3056_s1 = smov 13  }
   0xc   :  { %s3166_s19 = sld [smem:[%s3647_s0 + %s3053_s15]]   ;;  %s3057_s7 = smov 14  }
   0xd   :  { %s3171_s24 = sld [smem:[%s3647_s0 + %s3054_s20]]   ;;  %s3058_s15 = smov 15  }
   0xe   :  { %3661 = sst [smem:[#allocation53_spill]] %s3151_s3  ;;  %s3059_s22 = smov 16  }
   0xf   :  { %s3176_s30 = sld [smem:[%s3647_s0 + %s3055_s26]]   ;;  %s3060_s28 = smov 17  }
  0x10   :  { %3662 = sst [smem:[#allocation54_spill]] %s3161_s14 }
  0x11   :  { %s3181_s6 = sld [smem:[%s3647_s0 + %s3056_s1]]  }
  0x12   :  { %3663 = sst [smem:[#allocation55_spill]] %s3166_s19 }
  0x13   :  { %s3186_s12 = sld [smem:[%s3647_s0 + %s3057_s7]]   ;;  %s3061_s7 = smov 18  }
  0x14   :  { %s3191_s20 = sld [smem:[%s3647_s0 + %s3058_s15]]   ;;  %s3062_s15 = smov 19  }
  0x15   :  { %3664 = sst [smem:[#allocation56_spill]] %s3176_s30 }
  0x16   :  { %s3196_s27 = sld [smem:[%s3647_s0 + %s3059_s22]]   ;;  %s3063_s22 = smov 20  }
  0x17   :  { %s3201_s4 = sld [smem:[%s3647_s0 + %s3060_s28]]   ;;  %s3064_s28 = smov 21  }
  0x18   :  { %s3206_s21 = sld [smem:[%s3647_s0 + %s3061_s7]]   ;;  %s3065_s7 = smov 22  }
  0x19   :  { %3665 = sst [smem:[#allocation57_spill]] %s3186_s12 }
  0x1a   :  { %3666 = sst [smem:[#allocation58_spill]] %s3191_s20 }
  0x1b   :  { %s3211_s20 = sld [smem:[%s3647_s0 + %s3062_s15]]   ;;  %s3066_s15 = smov 23  }
  0x1c   :  { %s3216_s14 = sld [smem:[%s3647_s0 + %s3063_s22]]   ;;  %s3067_s22 = smov 24  }
  0x1d   :  { %3667 = sst [smem:[#allocation59_spill]] %s3201_s4 }
  0x1e   :  { %s3221_s4 = sld [smem:[%s3647_s0 + %s3064_s28]]   ;;  %s3068_s28 = smov 25  }
  0x1f   :  { %s3226_s12 = sld [smem:[%s3647_s0 + %s3065_s7]]   ;;  %s3069_s7 = smov 26  }
  0x20   :  { %s3241_s30 = sld [smem:[%s3647_s0 + %s3068_s28]]   ;;  %s3072_s28 = smov 29  }
  0x21   :  { %3668 = sst [smem:[#allocation60_spill]] %s3211_s20 }
  0x22   :  { %3669 = sst [smem:[#allocation61_spill]] %s3216_s14 }
  0x23   :  { %s3231_s20 = sld [smem:[%s3647_s0 + %s3066_s15]]   ;;  %s3070_s15 = smov 27  }
  0x24   :  { %s3236_s14 = sld [smem:[%s3647_s0 + %s3067_s22]]   ;;  %s3071_s22 = smov 28  }
  0x25   :  { %3670 = sst [smem:[#allocation62_spill]] %s3226_s12 }
  0x26   :  { %s3246_s12 = sld [smem:[%s3647_s0 + %s3069_s7]]  }
  0x27   :  { %s3251_s19 = sld [smem:[%s3647_s0 + %s3070_s15]]  }
  0x28   :  { %s3261_s3 = sld [smem:[%s3647_s0 + %s3072_s28]]  }
  0x2a   :  { %3671 = sst [smem:[#allocation63_spill]] %s3236_s14 }
  0x2b   :  { %s3256_s14 = sld [smem:[%s3647_s0 + %s3071_s22]]  }
  0x2c   :  { %64 = vsyncpa [#allocation3], 0 }
  0x2d   :  { %65 = vsyncpa [#allocation6], 0 }
  0x2e   :  { %66 = vsyncpa [#allocation9], 0 }
  0x2f   :  { %67 = vsyncpa [#allocation12], 0 }
  0x30   :  { %68 = vsyncpa [#allocation15], 0 }
  0x31   :  { %69 = vsyncpa [#allocation18], 0 }
  0x32   :  { %70 = vsyncpa [#allocation21], 0 }
  0x33   :  { %71 = vsyncpa [#allocation24], 0 }
  0x34   :  { %72 = vsyncpa [#allocation27], 0 }
  0x35   :  { %73 = vsyncpa [#allocation30], 0 }
  0x36   :  { %74 = vsyncpa [#allocation33], 0 }
  0x37   :  { %75 = vsyncpa [#allocation36], 0 }
  0x38   :  { %76 = vsyncpa [#allocation4], 0  ;;  %s3073_s7 = smov [#allocation5]   ;;  %s3074_s0 = smov [#allocation8]  }
  0x39   :  { %s95_s10 = sshll.u32 %s3073_s7, 4  ;;  %s115_s11 = sshll.u32 %s3074_s0, 4  ;;  %s96_s10 = int_to_ptr.vmem [resolvable:$true] %s95_s10  ;;  %s116_s11 = int_to_ptr.vmem [resolvable:$true] %s115_s11 }
  0x3a   :  { %s2490_s15 = scalar_lea.hbm %s3121_s9, 32 }
  0x3b   :  { %p2491_p0 = scmp.ne.s32.totalorder %s3121_s9, %s2490_s15  ;;  %p2494_p1 = scmp.lt.u32.totalorder %s2490_s15, %s3121_s9 }
  0x3d   :  { %p2496_p2 = pnand %p2494_p1, %p2491_p0 }
  0x3f   :  { %2499 = shalt.err (!%p2496_p2)
}
  0x40   :  { %s2500_s16 = scalar_lea.vmem %s96_s10, 32  ;;  %p2505_p4 = scmp.lt.s32.totalorder %s96_s10, %s96_s10 }
  0x41   :  { %p2501_p3 = scmp.ne.s32.totalorder %s96_s10, %s2500_s16  ;;  %p2506_p5 = scmp.lt.s32.totalorder %s2500_s16, %s2500_s16 }
  0x43   :  { %p2507_p6 = por %p2506_p5, %p2505_p4 }
  0x45   :  { %p2508_p7 = pnand %p2507_p6, %p2501_p3 }
  0x47   :  { %2511 = shalt.err (!%p2508_p7)
}
  0x48   :  { %98 = dma.hbm_to_vmem [thread:$0]  %s3121_s9, 32, %s96_s10, [#allocation6]  }
  0x49   :  { %s2512_s18 = scalar_lea.hbm %s3131_s17, 32 }
  0x4a   :  { %p2513_p8 = scmp.ne.s32.totalorder %s3131_s17, %s2512_s18  ;;  %p2516_p9 = scmp.lt.u32.totalorder %s2512_s18, %s3131_s17 }
  0x4c   :  { %p2518_p10 = pnand %p2516_p9, %p2513_p8 }
  0x4e   :  { %2521 = shalt.err (!%p2518_p10)
}
  0x4f   :  { %s2522_s22 = scalar_lea.vmem %s116_s11, 32  ;;  %p2527_p12 = scmp.lt.s32.totalorder %s116_s11, %s116_s11 }
  0x50   :  { %p2523_p11 = scmp.ne.s32.totalorder %s116_s11, %s2522_s22  ;;  %p2528_p13 = scmp.lt.s32.totalorder %s2522_s22, %s2522_s22 }
  0x52   :  { %p2529_p0 = por %p2528_p13, %p2527_p12 }
  0x54   :  { %p2530_p1 = pnand %p2529_p0, %p2523_p11 }
  0x56   :  { %2533 = shalt.err (!%p2530_p1)
}
  0x57   :  { %118 = dma.hbm_to_vmem [thread:$0]  %s3131_s17, 32, %s116_s11, [#allocation9]  }
  0x58   :  { %s3075_s23 = smov [#allocation11]   ;;  %s3076_s9 = smov [#allocation14]  }
  0x59   :  { %s137_s26 = sshll.u32 %s3075_s23, 4  ;;  %s157_s28 = sshll.u32 %s3076_s9, 4  ;;  %s138_s26 = int_to_ptr.vmem [resolvable:$true] %s137_s26  ;;  %s158_s28 = int_to_ptr.vmem [resolvable:$true] %s157_s28 }
  0x5a   :  { %s2534_s1 = scalar_lea.hbm %s3146_s29, 128 }
  0x5b   :  { %p2535_p2 = scmp.ne.s32.totalorder %s3146_s29, %s2534_s1  ;;  %p2538_p3 = scmp.lt.u32.totalorder %s2534_s1, %s3146_s29 }
  0x5d   :  { %p2540_p4 = pnand %p2538_p3, %p2535_p2 }
  0x5f   :  { %2543 = shalt.err (!%p2540_p4)
}
  0x60   :  { %s2544_s2 = scalar_lea.vmem %s138_s26, 128  ;;  %p2549_p6 = scmp.lt.s32.totalorder %s138_s26, %s138_s26 }
  0x61   :  { %p2545_p5 = scmp.ne.s32.totalorder %s138_s26, %s2544_s2  ;;  %p2550_p7 = scmp.lt.s32.totalorder %s2544_s2, %s2544_s2 }
  0x63   :  { %p2551_p8 = por %p2550_p7, %p2549_p6 }
  0x65   :  { %p2552_p9 = pnand %p2551_p8, %p2545_p5 }
  0x67   :  { %2555 = shalt.err (!%p2552_p9)
}
  0x68   :  { %140 = dma.hbm_to_vmem [thread:$0]  %s3146_s29, 128, %s138_s26, [#allocation12]  }
  0x69   :  { %s2556_s17 = scalar_lea.hbm %s3156_s8, 16 }
  0x6a   :  { %p2557_p10 = scmp.ne.s32.totalorder %s3156_s8, %s2556_s17  ;;  %p2560_p11 = scmp.lt.u32.totalorder %s2556_s17, %s3156_s8 }
  0x6c   :  { %p2562_p12 = pnand %p2560_p11, %p2557_p10 }
  0x6e   :  { %2565 = shalt.err (!%p2562_p12)
}
  0x6f   :  { %s2566_s7 = scalar_lea.vmem %s158_s28, 16  ;;  %s2570_s10 = scalar_lea.vmem %s158_s28, 32 }
  0x70   :  { %p2567_p13 = scmp.ne.s32.totalorder %s158_s28, %s2566_s7  ;;  %p2571_p0 = scmp.lt.s32.totalorder %s158_s28, %s158_s28 }
  0x71   :  { %p2572_p1 = scmp.lt.s32.totalorder %s2570_s10, %s2566_s7 }
  0x73   :  { %p2573_p2 = por %p2572_p1, %p2571_p0 }
  0x75   :  { %p2574_p3 = pnand %p2573_p2, %p2567_p13 }
  0x77   :  { %2577 = shalt.err (!%p2574_p3)
}
  0x78   :  { %160 = dma.hbm_to_vmem [thread:$0]  %s3156_s8, 16, %s158_s28, [#allocation15]  }
  0x79   :  { %s3077_s0 = smov [#allocation17]   ;;  %s2578_s11 = scalar_lea.hbm %s3171_s24, 256 }
  0x7a   :  { %s178_s29 = sshll.u32 %s3077_s0, 4  ;;  %p2579_p4 = scmp.ne.s32.totalorder %s3171_s24, %s2578_s11  ;;  %s179_s29 = int_to_ptr.vmem [resolvable:$true] %s178_s29 }
  0x7b   :  { %p2582_p5 = scmp.lt.u32.totalorder %s2578_s11, %s3171_s24 }
  0x7d   :  { %p2584_p6 = pnand %p2582_p5, %p2579_p4 }
  0x7f   :  { %2587 = shalt.err (!%p2584_p6)
}
  0x80   :  { %s2588_s15 = scalar_lea.vmem %s179_s29, 256  ;;  %p2593_p8 = scmp.lt.s32.totalorder %s179_s29, %s179_s29 }
  0x81   :  { %p2589_p7 = scmp.ne.s32.totalorder %s179_s29, %s2588_s15  ;;  %p2594_p9 = scmp.lt.s32.totalorder %s2588_s15, %s2588_s15 }
  0x83   :  { %p2595_p10 = por %p2594_p9, %p2593_p8 }
  0x85   :  { %p2596_p11 = pnand %p2595_p10, %p2589_p7 }
  0x87   :  { %2599 = shalt.err (!%p2596_p11)
}
  0x88   :  { %s3078_s16 = smov 64   ;;  %s3079_s8 = smov 4  }
  0x89   :  { %184 = dma.hbm_to_vmem [thread:$0]  %s3171_s24, 256, %s179_s29, [#allocation18], %s3078_s16, %s3078_s16, %s3079_s8  }
  0x8a   :  { %s3080_s18 = smov [#allocation20]   ;;  %s3081_s23 = smov [#allocation23]  }
  0x8b   :  { %s200_s22 = sshll.u32 %s3080_s18, 4  ;;  %s225_s26 = sshll.u32 %s3081_s23, 4  ;;  %s201_s22 = int_to_ptr.vmem [resolvable:$true] %s200_s22  ;;  %s226_s26 = int_to_ptr.vmem [resolvable:$true] %s225_s26 }
  0x8c   :  { %s2600_s9 = scalar_lea.hbm %s3181_s6, 256 }
  0x8d   :  { %p2601_p12 = scmp.ne.s32.totalorder %s3181_s6, %s2600_s9  ;;  %p2604_p13 = scmp.lt.u32.totalorder %s2600_s9, %s3181_s6 }
  0x8f   :  { %p2606_p0 = pnand %p2604_p13, %p2601_p12 }
  0x91   :  { %2609 = shalt.err (!%p2606_p0)
}
  0x92   :  { %s2610_s28 = scalar_lea.vmem %s201_s22, 256  ;;  %p2615_p2 = scmp.lt.s32.totalorder %s201_s22, %s201_s22 }
  0x93   :  { %p2611_p1 = scmp.ne.s32.totalorder %s201_s22, %s2610_s28  ;;  %p2616_p3 = scmp.lt.s32.totalorder %s2610_s28, %s2610_s28 }
  0x95   :  { %p2617_p4 = por %p2616_p3, %p2615_p2 }
  0x97   :  { %p2618_p5 = pnand %p2617_p4, %p2611_p1 }
  0x99   :  { %2621 = shalt.err (!%p2618_p5)
}
  0x9a   :  { %206 = dma.hbm_to_vmem [thread:$0]  %s3181_s6, 256, %s201_s22, [#allocation21], %s3078_s16, %s3078_s16, %s3079_s8  }
  0x9b   :  { %s2622_s24 = scalar_lea.hbm %s3196_s27, 16 }
  0x9c   :  { %p2623_p6 = scmp.ne.s32.totalorder %s3196_s27, %s2622_s24  ;;  %p2626_p7 = scmp.lt.u32.totalorder %s2622_s24, %s3196_s27 }
  0x9e   :  { %p2628_p8 = pnand %p2626_p7, %p2623_p6 }
  0xa0   :  { %2631 = shalt.err (!%p2628_p8)
}
  0xa1   :  { %s2632_s1 = scalar_lea.vmem %s226_s26, 16  ;;  %s2636_s2 = scalar_lea.vmem %s226_s26, 32 }
  0xa2   :  { %p2633_p9 = scmp.ne.s32.totalorder %s226_s26, %s2632_s1  ;;  %p2637_p10 = scmp.lt.s32.totalorder %s226_s26, %s226_s26 }
  0xa3   :  { %p2638_p11 = scmp.lt.s32.totalorder %s2636_s2, %s2632_s1 }
  0xa5   :  { %p2639_p12 = por %p2638_p11, %p2637_p10 }
  0xa7   :  { %p2640_p13 = pnand %p2639_p12, %p2633_p9 }
  0xa9   :  { %2643 = shalt.err (!%p2640_p13)
}
  0xaa   :  { %228 = dma.hbm_to_vmem [thread:$0]  %s3196_s27, 16, %s226_s26, [#allocation24]  }
  0xab   :  { %s3082_s6 = smov [#allocation26]   ;;  %s2644_s7 = scalar_lea.hbm %s3206_s21, 16 }
  0xac   :  { %s245_s17 = sshll.u32 %s3082_s6, 4  ;;  %p2645_p0 = scmp.ne.s32.totalorder %s3206_s21, %s2644_s7  ;;  %s246_s17 = int_to_ptr.vmem [resolvable:$true] %s245_s17 }
  0xad   :  { %p2648_p1 = scmp.lt.u32.totalorder %s2644_s7, %s3206_s21 }
  0xaf   :  { %p2650_p2 = pnand %p2648_p1, %p2645_p0 }
  0xb1   :  { %2653 = shalt.err (!%p2650_p2)
}
  0xb2   :  { %s2654_s10 = scalar_lea.vmem %s246_s17, 16  ;;  %s2658_s0 = scalar_lea.vmem %s246_s17, 32 }
  0xb3   :  { %p2655_p3 = scmp.ne.s32.totalorder %s246_s17, %s2654_s10  ;;  %p2659_p4 = scmp.lt.s32.totalorder %s246_s17, %s246_s17 }
  0xb4   :  { %p2660_p5 = scmp.lt.s32.totalorder %s2658_s0, %s2654_s10 }
  0xb6   :  { %p2661_p6 = por %p2660_p5, %p2659_p4 }
  0xb8   :  { %p2662_p7 = pnand %p2661_p6, %p2655_p3 }
  0xba   :  { %2665 = shalt.err (!%p2662_p7)
}
  0xbb   :  { %248 = dma.hbm_to_vmem [thread:$0]  %s3206_s21, 16, %s246_s17, [#allocation27]  }
  0xbc   :  { %s3083_s27 = smov [#allocation29]   ;;  %s3084_s11 = smov [#allocation32]  }
  0xbd   :  { %s266_s29 = sshll.u32 %s3083_s27, 4  ;;  %s289_s15 = sshll.u32 %s3084_s11, 4  ;;  %s267_s29 = int_to_ptr.vmem [resolvable:$true] %s266_s29  ;;  %s3295_s15 = int_to_ptr.vmem [resolvable:$true] %s289_s15 }
  0xbe   :  { %s2666_s16 = scalar_lea.hbm %s3221_s4, 512 }
  0xbf   :  { %p2667_p8 = scmp.ne.s32.totalorder %s3221_s4, %s2666_s16  ;;  %p2670_p9 = scmp.lt.u32.totalorder %s2666_s16, %s3221_s4 }
  0xc1   :  { %p2672_p10 = pnand %p2670_p9, %p2667_p8 }
  0xc3   :  { %2675 = shalt.err (!%p2672_p10)
}
  0xc4   :  { %s2676_s8 = scalar_lea.vmem %s267_s29, 512  ;;  %p2681_p12 = scmp.lt.s32.totalorder %s267_s29, %s267_s29 }
  0xc5   :  { %p2677_p11 = scmp.ne.s32.totalorder %s267_s29, %s2676_s8  ;;  %p2682_p13 = scmp.lt.s32.totalorder %s2676_s8, %s2676_s8 }
  0xc7   :  { %p2683_p0 = por %p2682_p13, %p2681_p12 }
  0xc9   :  { %p2684_p1 = pnand %p2683_p0, %p2677_p11 }
  0xcb   :  { %2687 = shalt.err (!%p2684_p1)
}
  0xcc   :  { %s3085_s21 = smov 128   ;;  %s3086_s18 = smov 8  }
  0xcd   :  { %272 = dma.hbm_to_vmem [thread:$0]  %s3221_s4, 512, %s267_s29, [#allocation30], %s3085_s21, %s3085_s21, %s3086_s18  }
  0xce   :  { %s2688_s22 = scalar_lea.hbm %s3231_s20, 16 }
  0xcf   :  { %p2689_p2 = scmp.ne.s32.totalorder %s3231_s20, %s2688_s22  ;;  %p2692_p3 = scmp.lt.u32.totalorder %s2688_s22, %s3231_s20 }
  0xd1   :  { %p2694_p4 = pnand %p2692_p3, %p2689_p2 }
  0xd3   :  { %2697 = shalt.err (!%p2694_p4)
}
  0xd4   :  { %s2698_s23 = scalar_lea.vmem %s3295_s15, 16  ;;  %s2702_s26 = scalar_lea.vmem %s3295_s15, 32 }
  0xd5   :  { %p2699_p5 = scmp.ne.s32.totalorder %s3295_s15, %s2698_s23  ;;  %p2703_p6 = scmp.lt.s32.totalorder %s3295_s15, %s3295_s15 }
  0xd6   :  { %p2704_p7 = scmp.lt.s32.totalorder %s2702_s26, %s2698_s23 }
  0xd8   :  { %p2705_p8 = por %p2704_p7, %p2703_p6 }
  0xda   :  { %p2706_p9 = pnand %p2705_p8, %p2699_p5 }
  0xdc   :  { %2709 = shalt.err (!%p2706_p9)
}
  0xdd   :  { %292 = dma.hbm_to_vmem [thread:$0]  %s3231_s20, 16, %s3295_s15, [#allocation33]  }
  0xde   :  { %s3087_s4 = smov [#allocation35]   ;;  %s3088_s28 = smov [#allocation2]  }
  0xdf   :  { %s308_s9 = sshll.u32 %s3087_s4, 4  ;;  %s82_s24 = sshll.u32 %s3088_s28, 4  ;;  %s309_s9 = int_to_ptr.vmem [resolvable:$true] %s308_s9  ;;  %s3314_s24 = int_to_ptr.vmem [resolvable:$true] %s82_s24 }
  0xe0   :  { %s2710_s1 = scalar_lea.hbm %s3241_s30, 512 }
  0xe1   :  { %p2711_p10 = scmp.ne.s32.totalorder %s3241_s30, %s2710_s1  ;;  %p2714_p11 = scmp.lt.u32.totalorder %s2710_s1, %s3241_s30 }
  0xe3   :  { %p2716_p12 = pnand %p2714_p11, %p2711_p10 }
  0xe5   :  { %2719 = shalt.err (!%p2716_p12)
}
  0xe6   :  { %s2720_s2 = scalar_lea.vmem %s309_s9, 512  ;;  %p2725_p0 = scmp.lt.s32.totalorder %s309_s9, %s309_s9 }
  0xe7   :  { %p2721_p13 = scmp.ne.s32.totalorder %s309_s9, %s2720_s2  ;;  %p2726_p1 = scmp.lt.s32.totalorder %s2720_s2, %s2720_s2 }
  0xe9   :  { %p2727_p2 = por %p2726_p1, %p2725_p0 }
  0xeb   :  { %p2728_p3 = pnand %p2727_p2, %p2721_p13 }
  0xed   :  { %2731 = shalt.err (!%p2728_p3)
}
  0xee   :  { %314 = dma.hbm_to_vmem [thread:$0]  %s3241_s30, 512, %s309_s9, [#allocation36], %s3085_s21, %s3085_s21, %s3086_s18  }
  0xef   :  { %s2732_s20 = scalar_lea.hbm %s3116_s5, 256 }
  0xf0   :  { %p2733_p4 = scmp.ne.s32.totalorder %s3116_s5, %s2732_s20  ;;  %p2736_p5 = scmp.lt.u32.totalorder %s2732_s20, %s3116_s5 }
  0xf2   :  { %p2738_p6 = pnand %p2736_p5, %p2733_p4 }
  0xf4   :  { %2741 = shalt.err (!%p2738_p6)
}
  0xf5   :  { %s2742_s6 = scalar_lea.vmem %s3314_s24, 256  ;;  %p2747_p8 = scmp.lt.s32.totalorder %s3314_s24, %s3314_s24 }
  0xf6   :  { %p2743_p7 = scmp.ne.s32.totalorder %s3314_s24, %s2742_s6  ;;  %p2748_p9 = scmp.lt.s32.totalorder %s2742_s6, %s2742_s6 }
  0xf8   :  { %p2749_p10 = por %p2748_p9, %p2747_p8 }
  0xfa   :  { %p2750_p11 = pnand %p2749_p10, %p2743_p7 }
  0xfc   :  { %2753 = shalt.err (!%p2750_p11)
}
  0xfd   :  { %88 = dma.hbm_to_vmem [thread:$0]  %s3116_s5, 256, %s3314_s24, [#allocation3], %s3085_s21, %s3085_s21, %s3086_s18  }
  0xfe   :  { %s3089_s30 = smov [#allocation7]   ;;  %s3090_s7 = smov [#allocation10]  }
  0xff   :  { %s105_s17 = sshll.u32 %s3089_s30, 4  ;;  %s127_s10 = sshll.u32 %s3090_s7, 4  ;;  %s106_s17 = int_to_ptr.vmem [resolvable:$true] %s105_s17  ;;  %s128_s10 = int_to_ptr.vmem [resolvable:$true] %s127_s10 }
 0x100   :  { %s2754_s0 = scalar_lea.hbm %s3126_s13, 32 }
 0x101   :  { %p2755_p12 = scmp.ne.s32.totalorder %s3126_s13, %s2754_s0  ;;  %p2758_p13 = scmp.lt.u32.totalorder %s2754_s0, %s3126_s13 }
 0x103   :  { %p2760_p0 = pnand %p2758_p13, %p2755_p12 }
 0x105   :  { %2763 = shalt.err (!%p2760_p0)
}
 0x106   :  { %s2764_s27 = scalar_lea.vmem %s106_s17, 32  ;;  %p2769_p2 = scmp.lt.s32.totalorder %s106_s17, %s106_s17 }
 0x107   :  { %p2765_p1 = scmp.ne.s32.totalorder %s106_s17, %s2764_s27  ;;  %p2770_p3 = scmp.lt.s32.totalorder %s2764_s27, %s2764_s27 }
 0x109   :  { %p2771_p4 = por %p2770_p3, %p2769_p2 }
 0x10b   :  { %p2772_p5 = pnand %p2771_p4, %p2765_p1 }
 0x10d   :  { %2775 = shalt.err (!%p2772_p5)
}
 0x10e   :  { %108 = dma.hbm_to_vmem [thread:$0]  %s3126_s13, 32, %s106_s17, [#allocation6]  }
 0x10f   :  { %s2776_s5 = scalar_lea.hbm %s3141_s25, 32 }
 0x110   :  { %p2777_p6 = scmp.ne.s32.totalorder %s3141_s25, %s2776_s5  ;;  %p2780_p7 = scmp.lt.u32.totalorder %s2776_s5, %s3141_s25 }
 0x112   :  { %p2782_p8 = pnand %p2780_p7, %p2777_p6 }
 0x114   :  { %2785 = shalt.err (!%p2782_p8)
}
 0x115   :  { %s2786_s29 = scalar_lea.vmem %s128_s10, 32  ;;  %p2791_p10 = scmp.lt.s32.totalorder %s128_s10, %s128_s10 }
 0x116   :  { %p2787_p9 = scmp.ne.s32.totalorder %s128_s10, %s2786_s29  ;;  %p2792_p11 = scmp.lt.s32.totalorder %s2786_s29, %s2786_s29 }
 0x118   :  { %p2793_p12 = por %p2792_p11, %p2791_p10 }
 0x11a   :  { %p2794_p13 = pnand %p2793_p12, %p2787_p9 }
 0x11c   :  { %2797 = shalt.err (!%p2794_p13)
}
 0x11d   :  { %s3672_s11 = sld [smem:[#allocation53_spill]]  ;;  %s3091_s15 = smov [#allocation13]  }
 0x11e   :  { %130 = dma.hbm_to_vmem [thread:$0]  %s3141_s25, 32, %s128_s10, [#allocation9]  }
 0x11f   :  { %s147_s16 = sshll.u32 %s3091_s15, 4  ;;  %s3092_s13 = smov [#allocation16]   ;;  %s148_s16 = int_to_ptr.vmem [resolvable:$true] %s147_s16 }
 0x120   :  { %s169_s8 = sshll.u32 %s3092_s13, 4  ;;  %s170_s8 = int_to_ptr.vmem [resolvable:$true] %s169_s8 }
 0x123   :  { %s2798_s21 = scalar_lea.hbm %s3672_s11, 16 }
 0x124   :  { %p2799_p0 = scmp.ne.s32.totalorder %s3672_s11, %s2798_s21  ;;  %p2802_p1 = scmp.lt.u32.totalorder %s2798_s21, %s3672_s11 }
 0x126   :  { %p2804_p2 = pnand %p2802_p1, %p2799_p0 }
 0x128   :  { %2807 = shalt.err (!%p2804_p2)
}
 0x129   :  { %s2808_s18 = scalar_lea.vmem %s148_s16, 16  ;;  %s2812_s22 = scalar_lea.vmem %s148_s16, 32 }
 0x12a   :  { %p2809_p3 = scmp.ne.s32.totalorder %s148_s16, %s2808_s18  ;;  %p2813_p4 = scmp.lt.s32.totalorder %s148_s16, %s148_s16 }
 0x12b   :  { %p2814_p5 = scmp.lt.s32.totalorder %s2812_s22, %s2808_s18 }
 0x12d   :  { %p2815_p6 = por %p2814_p5, %p2813_p4 }
 0x12f   :  { %p2816_p7 = pnand %p2815_p6, %p2809_p3 }
 0x131   :  { %2819 = shalt.err (!%p2816_p7)
}
 0x132   :  { %s3673_s25 = sld [smem:[#allocation55_spill]] }
 0x133   :  { %150 = dma.hbm_to_vmem [thread:$0]  %s3672_s11, 16, %s148_s16, [#allocation12]  }
 0x138   :  { %s2820_s23 = scalar_lea.hbm %s3673_s25, 16 }
 0x139   :  { %p2821_p8 = scmp.ne.s32.totalorder %s3673_s25, %s2820_s23  ;;  %p2824_p9 = scmp.lt.u32.totalorder %s2820_s23, %s3673_s25 }
 0x13b   :  { %p2826_p10 = pnand %p2824_p9, %p2821_p8 }
 0x13d   :  { %2829 = shalt.err (!%p2826_p10)
}
 0x13e   :  { %s2830_s26 = scalar_lea.vmem %s170_s8, 16  ;;  %s2834_s4 = scalar_lea.vmem %s170_s8, 32 }
 0x13f   :  { %p2831_p11 = scmp.ne.s32.totalorder %s170_s8, %s2830_s26  ;;  %p2835_p12 = scmp.lt.s32.totalorder %s170_s8, %s170_s8 }
 0x140   :  { %p2836_p13 = scmp.lt.s32.totalorder %s2834_s4, %s2830_s26 }
 0x142   :  { %p2837_p0 = por %p2836_p13, %p2835_p12 }
 0x144   :  { %p2838_p1 = pnand %p2837_p0, %p2831_p11 }
 0x146   :  { %2841 = shalt.err (!%p2838_p1)
}
 0x147   :  { %s3674_s9 = sld [smem:[#allocation56_spill]]  ;;  %s3093_s28 = smov [#allocation19]  }
 0x148   :  { %172 = dma.hbm_to_vmem [thread:$0]  %s3673_s25, 16, %s170_s8, [#allocation15]  }
 0x149   :  { %s191_s24 = sshll.u32 %s3093_s28, 4  ;;  %s3094_s1 = smov [#allocation22]   ;;  %s192_s24 = int_to_ptr.vmem [resolvable:$true] %s191_s24 }
 0x14a   :  { %s213_s2 = sshll.u32 %s3094_s1, 4  ;;  %s214_s2 = int_to_ptr.vmem [resolvable:$true] %s213_s2 }
 0x14d   :  { %s2842_s20 = scalar_lea.hbm %s3674_s9, 16 }
 0x14e   :  { %p2843_p2 = scmp.ne.s32.totalorder %s3674_s9, %s2842_s20  ;;  %p2846_p3 = scmp.lt.u32.totalorder %s2842_s20, %s3674_s9 }
 0x150   :  { %p2848_p4 = pnand %p2846_p3, %p2843_p2 }
 0x152   :  { %2851 = shalt.err (!%p2848_p4)
}
 0x153   :  { %s2852_s6 = scalar_lea.vmem %s192_s24, 16  ;;  %s2856_s30 = scalar_lea.vmem %s192_s24, 32 }
 0x154   :  { %p2853_p5 = scmp.ne.s32.totalorder %s192_s24, %s2852_s6  ;;  %p2857_p6 = scmp.lt.s32.totalorder %s192_s24, %s192_s24 }
 0x155   :  { %p2858_p7 = scmp.lt.s32.totalorder %s2856_s30, %s2852_s6 }
 0x157   :  { %p2859_p8 = por %p2858_p7, %p2857_p6 }
 0x159   :  { %p2860_p9 = pnand %p2859_p8, %p2853_p5 }
 0x15b   :  { %2863 = shalt.err (!%p2860_p9)
}
 0x15c   :  { %s3675_s17 = sld [smem:[#allocation57_spill]] }
 0x15d   :  { %194 = dma.hbm_to_vmem [thread:$0]  %s3674_s9, 16, %s192_s24, [#allocation18]  }
 0x162   :  { %s2864_s7 = scalar_lea.hbm %s3675_s17, 16 }
 0x163   :  { %p2865_p10 = scmp.ne.s32.totalorder %s3675_s17, %s2864_s7  ;;  %p2868_p11 = scmp.lt.u32.totalorder %s2864_s7, %s3675_s17 }
 0x165   :  { %p2870_p12 = pnand %p2868_p11, %p2865_p10 }
 0x167   :  { %2873 = shalt.err (!%p2870_p12)
}
 0x168   :  { %s2874_s10 = scalar_lea.vmem %s214_s2, 16  ;;  %s2878_s0 = scalar_lea.vmem %s214_s2, 32 }
 0x169   :  { %p2875_p13 = scmp.ne.s32.totalorder %s214_s2, %s2874_s10  ;;  %p2879_p0 = scmp.lt.s32.totalorder %s214_s2, %s214_s2 }
 0x16a   :  { %p2880_p1 = scmp.lt.s32.totalorder %s2878_s0, %s2874_s10 }
 0x16c   :  { %p2881_p2 = por %p2880_p1, %p2879_p0 }
 0x16e   :  { %p2882_p3 = pnand %p2881_p2, %p2875_p13 }
 0x170   :  { %2885 = shalt.err (!%p2882_p3)
}
 0x171   :  { %s3676_s27 = sld [smem:[#allocation59_spill]]  ;;  %s3095_s5 = smov [#allocation25]  }
 0x172   :  { %216 = dma.hbm_to_vmem [thread:$0]  %s3675_s17, 16, %s214_s2, [#allocation21]  }
 0x173   :  { %s235_s29 = sshll.u32 %s3095_s5, 4  ;;  %s3096_s11 = smov [#allocation28]   ;;  %s236_s29 = int_to_ptr.vmem [resolvable:$true] %s235_s29 }
 0x174   :  { %s257_s15 = sshll.u32 %s3096_s11, 4  ;;  %s258_s15 = int_to_ptr.vmem [resolvable:$true] %s257_s15 }
 0x177   :  { %s2886_s16 = scalar_lea.hbm %s3676_s27, 16 }
 0x178   :  { %p2887_p4 = scmp.ne.s32.totalorder %s3676_s27, %s2886_s16  ;;  %p2890_p5 = scmp.lt.u32.totalorder %s2886_s16, %s3676_s27 }
 0x17a   :  { %p2892_p6 = pnand %p2890_p5, %p2887_p4 }
 0x17c   :  { %2895 = shalt.err (!%p2892_p6)
}
 0x17d   :  { %s2896_s13 = scalar_lea.vmem %s236_s29, 16  ;;  %s2900_s8 = scalar_lea.vmem %s236_s29, 32 }
 0x17e   :  { %p2897_p7 = scmp.ne.s32.totalorder %s236_s29, %s2896_s13  ;;  %p2901_p8 = scmp.lt.s32.totalorder %s236_s29, %s236_s29 }
 0x17f   :  { %p2902_p9 = scmp.lt.s32.totalorder %s2900_s8, %s2896_s13 }
 0x181   :  { %p2903_p10 = por %p2902_p9, %p2901_p8 }
 0x183   :  { %p2904_p11 = pnand %p2903_p10, %p2897_p7 }
 0x185   :  { %2907 = shalt.err (!%p2904_p11)
}
 0x186   :  { %s3677_s21 = sld [smem:[#allocation61_spill]] }
 0x187   :  { %238 = dma.hbm_to_vmem [thread:$0]  %s3676_s27, 16, %s236_s29, [#allocation24]  }
 0x18c   :  { %s2908_s18 = scalar_lea.hbm %s3677_s21, 16 }
 0x18d   :  { %p2909_p12 = scmp.ne.s32.totalorder %s3677_s21, %s2908_s18  ;;  %p2912_p13 = scmp.lt.u32.totalorder %s2908_s18, %s3677_s21 }
 0x18f   :  { %p2914_p0 = pnand %p2912_p13, %p2909_p12 }
 0x191   :  { %2917 = shalt.err (!%p2914_p0)
}
 0x192   :  { %s2918_s22 = scalar_lea.vmem %s258_s15, 16  ;;  %s2922_s25 = scalar_lea.vmem %s258_s15, 32 }
 0x193   :  { %p2919_p1 = scmp.ne.s32.totalorder %s258_s15, %s2918_s22  ;;  %p2923_p2 = scmp.lt.s32.totalorder %s258_s15, %s258_s15 }
 0x194   :  { %p2924_p3 = scmp.lt.s32.totalorder %s2922_s25, %s2918_s22 }
 0x196   :  { %p2925_p4 = por %p2924_p3, %p2923_p2 }
 0x198   :  { %p2926_p5 = pnand %p2925_p4, %p2919_p1 }
 0x19a   :  { %2929 = shalt.err (!%p2926_p5)
}
 0x19b   :  { %s3678_s23 = sld [smem:[#allocation62_spill]]  ;;  %s3097_s26 = smov [#allocation31]  }
 0x19c   :  { %260 = dma.hbm_to_vmem [thread:$0]  %s3677_s21, 16, %s258_s15, [#allocation27]  }
 0x19d   :  { %s279_s4 = sshll.u32 %s3097_s26, 4  ;;  %s3098_s9 = smov [#allocation34]   ;;  %s280_s4 = int_to_ptr.vmem [resolvable:$true] %s279_s4 }
 0x19e   :  { %s299_s28 = sshll.u32 %s3098_s9, 4  ;;  %s300_s28 = int_to_ptr.vmem [resolvable:$true] %s299_s28 }
 0x1a1   :  { %s2930_s24 = scalar_lea.hbm %s3678_s23, 16 }
 0x1a2   :  { %p2931_p6 = scmp.ne.s32.totalorder %s3678_s23, %s2930_s24  ;;  %p2934_p7 = scmp.lt.u32.totalorder %s2930_s24, %s3678_s23 }
 0x1a4   :  { %p2936_p8 = pnand %p2934_p7, %p2931_p6 }
 0x1a6   :  { %2939 = shalt.err (!%p2936_p8)
}
 0x1a7   :  { %s2940_s1 = scalar_lea.vmem %s280_s4, 16  ;;  %s2944_s2 = scalar_lea.vmem %s280_s4, 32 }
 0x1a8   :  { %p2941_p9 = scmp.ne.s32.totalorder %s280_s4, %s2940_s1  ;;  %p2945_p10 = scmp.lt.s32.totalorder %s280_s4, %s280_s4 }
 0x1a9   :  { %p2946_p11 = scmp.lt.s32.totalorder %s2944_s2, %s2940_s1 }
 0x1ab   :  { %p2947_p12 = por %p2946_p11, %p2945_p10 }
 0x1ad   :  { %p2948_p13 = pnand %p2947_p12, %p2941_p9 }
 0x1af   :  { %2951 = shalt.err (!%p2948_p13)
}
 0x1b0   :  { %s3679_s20 = sld [smem:[#allocation63_spill]] }
 0x1b1   :  { %282 = dma.hbm_to_vmem [thread:$0]  %s3678_s23, 16, %s280_s4, [#allocation30]  }
 0x1b6   :  { %s2952_s6 = scalar_lea.hbm %s3679_s20, 16 }
 0x1b7   :  { %p2953_p0 = scmp.ne.s32.totalorder %s3679_s20, %s2952_s6  ;;  %p2956_p1 = scmp.lt.u32.totalorder %s2952_s6, %s3679_s20 }
 0x1b9   :  { %p2958_p2 = pnand %p2956_p1, %p2953_p0 }
 0x1bb   :  { %2961 = shalt.err (!%p2958_p2)
}
 0x1bc   :  { %s2962_s30 = scalar_lea.vmem %s300_s28, 16  ;;  %s2966_s17 = scalar_lea.vmem %s300_s28, 32 }
 0x1bd   :  { %p2963_p3 = scmp.ne.s32.totalorder %s300_s28, %s2962_s30  ;;  %p2967_p4 = scmp.lt.s32.totalorder %s300_s28, %s300_s28 }
 0x1be   :  { %p2968_p5 = scmp.lt.s32.totalorder %s2966_s17, %s2962_s30 }
 0x1c0   :  { %p2969_p6 = por %p2968_p5, %p2967_p4 }
 0x1c2   :  { %p2970_p7 = pnand %p2969_p6, %p2963_p3 }
 0x1c4   :  { %2973 = shalt.err (!%p2970_p7)
}
 0x1c5   :  { %302 = dma.hbm_to_vmem [thread:$0]  %s3679_s20, 16, %s300_s28, [#allocation33]  }
 0x1c6   :  { %s3099_s7 = smov [#allocation37]   ;;  %s2974_s0 = scalar_lea.hbm %s3246_s12, 16 }
 0x1c7   :  { %s321_s10 = sshll.u32 %s3099_s7, 4  ;;  %p2975_p8 = scmp.ne.s32.totalorder %s3246_s12, %s2974_s0  ;;  %s322_s10 = int_to_ptr.vmem [resolvable:$true] %s321_s10 }
 0x1c8   :  { %p2978_p9 = scmp.lt.u32.totalorder %s2974_s0, %s3246_s12 }
 0x1ca   :  { %p2980_p10 = pnand %p2978_p9, %p2975_p8 }
 0x1cc   :  { %2983 = shalt.err (!%p2980_p10)
}
 0x1cd   :  { %s2984_s27 = scalar_lea.vmem %s322_s10, 16  ;;  %s2988_s5 = scalar_lea.vmem %s322_s10, 32 }
 0x1ce   :  { %p2985_p11 = scmp.ne.s32.totalorder %s322_s10, %s2984_s27  ;;  %p2989_p12 = scmp.lt.s32.totalorder %s322_s10, %s322_s10 }
 0x1cf   :  { %p2990_p13 = scmp.lt.s32.totalorder %s2988_s5, %s2984_s27 }
 0x1d1   :  { %p2991_p0 = por %p2990_p13, %p2989_p12 }
 0x1d3   :  { %p2992_p1 = pnand %p2991_p0, %p2985_p11 }
 0x1d5   :  { %2995 = shalt.err (!%p2992_p1)
}
 0x1d6   :  { %324 = dma.hbm_to_vmem [thread:$0]  %s3246_s12, 16, %s322_s10, [#allocation36]  }
 0x1d7   :  { %3018 = dma.done.wait [#allocation3], 256  }
 0x1d8   :  { %3019 = vsyncadd [#allocation3], 4294967040 }
 0x1d9   :  { %3020 = dma.done.wait [#allocation6], 64  }
 0x1da   :  { %3021 = vsyncadd [#allocation6], 4294967232 }
 0x1db   :  { %3022 = dma.done.wait [#allocation9], 64  }
 0x1dc   :  { %3023 = vsyncadd [#allocation9], 4294967232 }
 0x1dd   :  { %3024 = dma.done.wait [#allocation12], 144  }
 0x1de   :  { %3025 = vsyncadd [#allocation12], 4294967152 }
 0x1df   :  { %3026 = dma.done.wait [#allocation15], 32  }
 0x1e0   :  { %3027 = vsyncadd [#allocation15], 4294967264 }
 0x1e1   :  { %3028 = dma.done.wait [#allocation18], 272  }
 0x1e2   :  { %3029 = vsyncadd [#allocation18], 4294967024 }
 0x1e3   :  { %3030 = dma.done.wait [#allocation21], 272  }
 0x1e4   :  { %3031 = vsyncadd [#allocation21], 4294967024 }
 0x1e5   :  { %3032 = dma.done.wait [#allocation24], 32  }
 0x1e6   :  { %3033 = vsyncadd [#allocation24], 4294967264 }
 0x1e7   :  { %3034 = dma.done.wait [#allocation27], 32  }
 0x1e8   :  { %3035 = vsyncadd [#allocation27], 4294967264 }
 0x1e9   :  { %3036 = dma.done.wait [#allocation30], 528  }
 0x1ea   :  { %3037 = vsyncadd [#allocation30], 4294966768 }
 0x1eb   :  { %3038 = dma.done.wait [#allocation33], 32  }
 0x1ec   :  { %3039 = vsyncadd [#allocation33], 4294967264 }
 0x1ed   :  { %3040 = dma.done.wait [#allocation36], 528  }
 0x1ee   :  { %3041 = vsyncadd [#allocation36], 4294966768  ;;  %v407_v0 = vlaneseq  ;;  %v3100_v1 = vmov 0.0   ;;  %vm3101_vm0 = vmmov 0   ;;  %v3393_v5 = vld [vmem:[#allocation5] sm:$0x3] }
 0x1ef   :  { %2243 = vmatprep.subr.bf16.mxu1 %v3100_v1  ;;  %2247 = vmatprep.mubr.msk.bf16.mxu1 %vm3101_vm0, %v3100_v1  ;;  %v2420_v7 = vld [vmem:[#allocation17] sm:$0xff]   ;;  %v2421_v9 = vld [vmem:[#allocation17 + $0x8] sm:$0xff]   ;;  %v404_v12 = vld [vmem:[#allocation11] sm:$0xff]  ;;  %vm432_vm1 = vcmask 253952   ;;  %vm428_vm2 = vcmask 261127   ;;  %vm507_vm3 = vcmask 261120  }
 0x1f0   :  { %v3381_v2 = vshrl.u32 %v407_v0, 7  ;;  %2240 = vmatprep.mubr.msk.f32.mxu0 %vm3101_vm0, %v3100_v1  ;;  %2244 = vmatpush3.bf16.msra.mxu1 %v2420_v7  ;;  %v401_v10 = vld [vmem:[#allocation2 + $0x8] sm:$0xff]  ;;  %v400_v13 = vld [vmem:[#allocation2] sm:$0xff]  ;;  %s3680_s12 = sld [smem:[#allocation54_spill]]  ;;  %v3102_v40 = vmov 0.0|0.0   ;;  %vm505_vm4 = vcmask 1041409  }
 0x1f1   :  { %2245 = vmatprep.subr.bf16.mxu1 %v3100_v1  ;;  %v403_v11 = vmul.f32 5.656854, %v401_v10  ;;  %v402_v15 = vmul.f32 5.656854, %v400_v13  ;;  %2314 = vmatprep.subr.bf16.mxu0 %v3102_v40  ;;  %v2163_v55 = vld [vmem:[#allocation13] ss:$0 sm:$0xff] }
 0x1f2   :  { %v3384_v3 = vsub.s32 1, %v3381_v2  ;;  %v3391_v4 = vsub.s32 0, %v3381_v2  ;;  %v2164_v60 = vld [vmem:[#allocation14] ss:$0 sm:$0xff]  ;;  %vm769_vm5 = vcmask 58368   ;;  %s3681_s29 = sld [smem:[#allocation58_spill]] }
 0x1f3   :  { %v406_v14 = vadd.f32 %v404_v12, %v403_v11  ;;  %v405_v18 = vadd.f32 %v404_v12, %v402_v15  ;;  %v2423_v11 = vld [vmem:[#allocation20 + $0x8] sm:$0xff]   ;;  %v3103_v12 = vmov 1966171168   ;;  %s3682_s11 = sld [smem:[#allocation60_spill]]  ;;  %vm1778_vm6 = vcmask 258048  }
 0x1f4   :  { %v417_v6 = vrot.slane %v3393_v5, %v3384_v3  ;;  %v410_v8 = vrot.slane %v3393_v5, %v3391_v4  ;;  %2246 = vmatpush3.bf16.msra.mxu1 %v2421_v9  ;;  %v2422_v9 = vld [vmem:[#allocation20] sm:$0xff]   ;;  %v714_v13 = vunpack.c.l.s4 %v3103_v12  ;;  %v2165_v15 = vld [vmem:[#allocation16] ss:$0 sm:$0xff]  ;;  %s3683_s15 = sld [smem:[#allocation52_spill]]  ;;  %vm1819_vm7 = vcmask 33792  }
 0x1f5   :  { %2320 = vmatprep.subr.bf16.mxu1 %v3102_v40  ;;  %vm1190_vm8 = vcmask 254976  }
 0x1f6   :  { %419 = vbcast.lane.b32.xlu0 %v417_v6, 256  ;;  %v490_v37 = vld [vmem:[%s3680_s12] sm:$0xff]  ;;  %v491_v38 = vld [vmem:[%s3680_s12 + $0x8] sm:$0xff]  ;;  %v492_v41 = vld [vmem:[%s3680_s12 + $0x10] sm:$0xff] }
 0x1f7   :  { %v2315_v39 = vpack.c.bf16 %v491_v38, %v490_v37  ;;  %v493_v42 = vld [vmem:[%s3680_s12 + $0x18] sm:$0xff]  ;;  %v758_v37 = vand.u32 127, %v407_v0 }
 0x1f8   :  { %v2318_v43 = vpack.c.bf16 %v493_v42, %v492_v41 }
 0x1f9   :  { %2316 = vmatpush3.bf16.msra.mxu0 %v2315_v39  ;;  %v3450_v39 = vsub.s32 %v758_v37, %v3381_v2 }
 0x1fa   :  { %412 = vbcast.lane.b32.xlu0 %v410_v8, 256  ;;  %2317 = vmatprep.subr.bf16.mxu0 %v3102_v40 }
 0x1fd   :  { %2319 = vmatpush3.bf16.msra.mxu0 %v2318_v43 }
 0x1fe   :  { %2251 = vmatprep.subr.bf16.mxu0 %v3100_v1 }
 0x268   :  { %v420_v16 = vpop.permute.xlu0 %419 }
 0x269   :  { %v422_v17 = vmul.f32 %v420_v16, %v406_v14  ;;  %v715_v14 = vunpack.c.0.s8 %v714_v13 }
 0x26b   :  { %v425_v19 = vrot.slane %v422_v17, 7  ;;  %v3435_v16 = vsub.s32 %v715_v14, %v3381_v2  ;;  %v852_v14 = vld [vmem:[%s3681_s29] sm:$0xff] }
 0x26c   :  { %v413_v20 = vpop.permute.xlu0 %412 }
 0x26d   :  { %v421_v21 = vmul.f32 %v413_v20, %v405_v18  ;;  %v433_v22 = vsel %vm432_vm1, %v425_v19, 0.0 }
 0x26e   :  { %434 = vadd.xlane.f32.xlu1 %v433_v22 }
 0x26f   :  { %v3401_v23 = vpack.c.bf16 %v422_v17, %v421_v21  ;;  %v429_v24 = vsel %vm428_vm2, %v421_v21, 0.0 }
 0x271   :  { %2248 = vmatmul.mubr.msk.bf16.vlgmr.msra.gmra.mrb[0].mxu1 %vm507_vm3, %v3401_v23 }
 0x272   :  { %430 = vadd.xlane.f32.xlu1 %v429_v24  ;;  %2267 = vmatprep.mubr.msk.f32.mxu1 %vm3101_vm0, %v3100_v1 }
 0x2fb   :  { %v435_v25 = vpop.xlane.xlu1 %434 }
 0x2fc   :  { %v438_v26 = vmul.f32 0.03125, %v435_v25 }
 0x2fe   :  { %v441_v27 = vrot.slane %v438_v26, 1 }
 0x2ff   :  { %v431_v28 = vpop.xlane.xlu1 %430 }
 0x300   :  { %v445_v29 = vsub.f32 %v422_v17, %v441_v27  ;;  %v437_v30 = vmul.f32 0.03125, %v431_v28 }
 0x302   :  { %v444_v31 = vsub.f32 %v421_v21, %v437_v30  ;;  %v447_v32 = vmul.f32 %v445_v29, %v445_v29  ;;  %v2167_v21 = vld [vmem:[#allocation19] ss:$0 sm:$0xff] }
 0x304   :  { %v450_v33 = vrot.slane %v447_v32, 7  ;;  %v446_v34 = vmul.f32 %v444_v31, %v444_v31 }
 0x306   :  { %v456_v35 = vsel %vm432_vm1, %v450_v33, 0.0  ;;  %v453_v36 = vsel %vm428_vm2, %v446_v34, 0.0 }
 0x307   :  { %457 = vadd.xlane.f32.xlu0 %v456_v35  ;;  %454 = vadd.xlane.f32.xlu1 %v453_v36 }
 0x344   :  { %v641_v44 = vpop.f32.mrb[0].mxu1 }
 0x345   :  { %v2249_v45 = vpop.f32.mrb[1].mxu1 }
 0x346   :  { %v644_v46 = vpop.f32.mrb[2].mxu1 }
 0x347   :  { %v2250_v47 = vpop.f32.mrb[3].mxu1  ;;  %v645_v28 = vadd.f32 %v2167_v21, %v644_v46 }
 0x394   :  { %v455_v48 = vpop.xlane.xlu1 %454  ;;  %v458_v49 = vpop.xlane.xlu0 %457 }
 0x395   :  { %v459_v50 = vmul.f32 0.03125, %v455_v48  ;;  %v460_v51 = vmul.f32 0.03125, %v458_v49  ;;  %v3104_v48 = vmov 0  }
 0x396   :  { %2417 = vset.pattern.permute.xlu0 %v3104_v48  ;;  %2416 = vset.pattern.permute.xlu1 %v3104_v48 }
 0x397   :  { %v461_v52 = vadd.f32 1e-08, %v459_v50  ;;  %v462_v53 = vadd.f32 1e-08, %v460_v51 }
 0x399   :  { %2426 = vrsqrt.f32 %v461_v52 }
 0x39a   :  { %2428 = vrsqrt.f32 %v462_v53 }
 0x3a3   :  { %v2427_v54 = vpop.eup %2426 }
 0x3a4   :  { %v2429_v56 = vpop.eup %2428  ;;  %v470_v57 = vmul.f32 %v2427_v54, %v444_v31 }
 0x3a5   :  { %v467_v58 = vrot.slane %v2429_v56, 1 }
 0x3a6   :  { %v479_v59 = vmul.f32 %v2163_v55, %v470_v57 }
 0x3a7   :  { %v471_v61 = vmul.f32 %v467_v58, %v445_v29 }
 0x3a8   :  { %v3418_v63 = vadd.f32 %v2164_v60, %v479_v59 }
 0x3a9   :  { %v480_v62 = vmul.f32 %v2163_v55, %v471_v61 }
 0x3aa   :  { %v503_v7 = vrot.slane %v3418_v63, 7 }
 0x3ab   :  { %v3420_v6 = vadd.f32 %v2164_v60, %v480_v62 }
 0x3ad   :  { %v504_v8 = vrot.slane %v3420_v6, 6 }
 0x3af   :  { %v506_v10 = vsel %vm505_vm4, %v504_v8, %v503_v7 }
 0x3b0   :  { %2241 = vmatmul.mubr.msk.f32.vlgmr.msra.gmra.mrb[0].mxu0 %vm507_vm3, %v506_v10 }
 0x3b1   :  { %2252 = vmatpush3.bf16.msra.mxu0 %v2422_v9  ;;  %2255 = vmatprep.mubr.msk.bf16.mxu0 %vm3101_vm0, %v3100_v1 }
 0x3b2   :  { %2253 = vmatprep.subr.bf16.mxu0 %v3100_v1 }
 0x3b5   :  { %2254 = vmatpush3.bf16.msra.mxu0 %v2423_v11 }
 0x3b6   :  { %2326 = vmatprep.subr.bf16.mxu0 %v3102_v40 }
 0x3b8   :  { %2256 = vmatmul.mubr.msk.bf16.vlgmr.msra.gmra.mrb[4].mxu0 %vm507_vm3, %v3401_v23  ;;  %v642_v23 = vadd.f32 %v2167_v21, %v641_v44  ;;  %v2171_v21 = vld [vmem:[#allocation22] ss:$0 sm:$0xff] }
 0x3b9   :  { %2278 = vmatprep.mubr.msk.f32.mxu0 %vm3101_vm0, %v3100_v1 }
 0x483   :  { %v576_v17 = vpop.f32.mrb[0].mxu0 }
 0x484   :  { %v577_v18 = vadd.f32 %v2165_v15, %v576_v17  ;;  %v2242_v19 = vpop.f32.mrb[1].mxu0  ;;  %v853_v15 = vld [vmem:[%s3681_s29 + $0x8] sm:$0xff] }
 0x485   :  { %v2321_v17 = vpack.c.bf16 %v853_v15, %v852_v14  ;;  %v855_v19 = vld [vmem:[%s3681_s29 + $0x18] sm:$0xff] }
 0x486   :  { %v719_v20 = vrot.slane %v577_v18, %v3435_v16  ;;  %v854_v18 = vld [vmem:[%s3681_s29 + $0x10] sm:$0xff]  ;;  %v1012_v14 = vld [vmem:[%s3682_s11 + $0x18] sm:$0xff] }
 0x487   :  { %2322 = vmatpush3.bf16.msra.mxu1 %v2321_v17  ;;  %v1098_v17 = vld [vmem:[#allocation29] sm:$0xff] }
 0x488   :  { %v720_v22 = vcombine.high %v719_v20, %v719_v20  ;;  %v727_v24 = vrot.slane %v719_v20, %v3435_v16  ;;  %2323 = vmatprep.subr.bf16.mxu1 %v3102_v40  ;;  %v2324_v20 = vpack.c.bf16 %v855_v19, %v854_v18  ;;  %v1099_v18 = vld [vmem:[#allocation29 + $0x8] sm:$0xff] }
 0x489   :  { %v2333_v19 = vpack.c.bf16 %v1099_v18, %v1098_v17 }
 0x48a   :  { %v738_v25 = vrot.slane %v727_v24, %v3391_v4  ;;  %v734_v26 = vrot.slane %v720_v22, %v3435_v16 }
 0x48b   :  { %v3441_v27 = vpop.f32.mrb[4].mxu0  ;;  %2325 = vmatpush3.bf16.msra.mxu1 %v2324_v20 }
 0x48c   :  { %v2257_v29 = vpop.f32.mrb[5].mxu0  ;;  %v745_v30 = vmul.f32 %v738_v25, %v642_v23  ;;  %v742_v31 = vrot.slane %v734_v26, %v3391_v4  ;;  %2332 = vmatprep.subr.bf16.mxu1 %v3102_v40  ;;  %v706_v22 = vadd.f32 %v2171_v21, %v3441_v27 }
 0x48d   :  { %v3444_v32 = vpop.f32.mrb[6].mxu0 }
 0x48e   :  { %v2258_v33 = vpop.f32.mrb[7].mxu0  ;;  %v747_v34 = vsel %vm507_vm3, %v745_v30, 0.0  ;;  %v746_v35 = vmul.f32 %v742_v31, %v645_v28  ;;  %v709_v24 = vadd.f32 %v2171_v21, %v3444_v32 }
 0x48f   :  { %748 = vadd.xlane.f32.xlu1 %v747_v34 }
 0x490   :  { %v750_v36 = vsel %vm507_vm3, %v746_v35, 0.0 }
 0x493   :  { %751 = vadd.xlane.f32.xlu1 %v750_v36 }
 0x51c   :  { %v749_v38 = vpop.xlane.xlu1 %748 }
 0x51d   :  { %v753_v41 = vmul.f32 0.17677669, %v749_v38 }
 0x51f   :  { %v762_v44 = vrot.slane %v753_v41, %v3450_v39 }
 0x520   :  { %v752_v42 = vpop.xlane.xlu1 %751 }
 0x521   :  { %v754_v43 = vmul.f32 0.17677669, %v752_v42 }
 0x523   :  { %v766_v45 = vrot.slane %v754_v43, %v3450_v39 }
 0x525   :  { %v767_v46 = vsel %vm505_vm4, %v766_v45, %v762_v44  ;;  %v2175_v45 = vld [vmem:[#allocation23] ss:$0 sm:$0xff] }
 0x526   :  { %v770_v47 = vsel %vm769_vm5, %v767_v46, -inf }
 0x527   :  { %771 = vmax.xlane.f32.xlu1 %v770_v47 }
 0x5b4   :  { %v772_v0 = vpop.xlane.xlu1 %771 }
 0x5b5   :  { %v777_v49 = vrot.slane %v772_v0, %v3391_v4  ;;  %v781_v50 = vrot.slane %v772_v0, %v3384_v3 }
 0x5b7   :  { %v784_v51 = vsub.f32 %v753_v41, %v777_v49  ;;  %v785_v52 = vsub.f32 %v754_v43, %v781_v50 }
 0x5b9   :  { %v786_v53 = vmul.f32 1.442695, %v784_v51  ;;  %v788_v54 = vmul.f32 1.442695, %v785_v52 }
 0x5bb   :  { %2430 = vpow2.f32 %v786_v53 }
 0x5bc   :  { %2432 = vpow2.f32 %v788_v54 }
 0x5c5   :  { %v2431_v55 = vpop.eup %2430 }
 0x5c6   :  { %v2433_v56 = vpop.eup %2432  ;;  %793 = vperm.xlu1 %2416, %v2431_v55  }
 0x5c7   :  { %796 = vperm.xlu0 %2417, %v2433_v56  }
 0x645   :  { %v794_v57 = vpop.permute.xlu1 %793 }
 0x646   :  { %v797_v58 = vpop.permute.xlu0 %796  ;;  %v801_v59 = vrot.slane %v794_v57, %v3450_v39 }
 0x647   :  { %v805_v60 = vrot.slane %v797_v58, %v3450_v39 }
 0x649   :  { %v806_v61 = vsel %vm505_vm4, %v805_v60, %v801_v59 }
 0x64a   :  { %v808_v62 = vsel %vm769_vm5, %v806_v61, 0.0 }
 0x64b   :  { %809 = vadd.xlane.f32.xlu1 %v808_v62 }
 0x6d8   :  { %v810_v7 = vpop.xlane.xlu1 %809 }
 0x6d9   :  { %v815_v8 = vrot.slane %v810_v7, %v3391_v4  ;;  %v819_v9 = vrot.slane %v810_v7, %v3384_v3 }
 0x6db   :  { %2434 = vrcp.f32 %v815_v8 }
 0x6dc   :  { %2436 = vrcp.f32 %v819_v9 }
 0x6e5   :  { %v2435_v10 = vpop.eup %2434 }
 0x6e6   :  { %v2437_v11 = vpop.eup %2436  ;;  %v823_v12 = vmul.f32 %v2435_v10, %v2431_v55  ;;  %v1009_v10 = vld [vmem:[%s3682_s11] sm:$0xff] }
 0x6e7   :  { %v825_v13 = vmul.f32 %v2437_v11, %v2433_v56  ;;  %v1010_v11 = vld [vmem:[%s3682_s11 + $0x8] sm:$0xff] }
 0x6e8   :  { %828 = vperm.xlu1 %2416, %v823_v12   ;;  %v2327_v12 = vpack.c.bf16 %v1010_v11, %v1009_v10 }
 0x6e9   :  { %833 = vperm.xlu0 %2417, %v825_v13   ;;  %v1011_v13 = vld [vmem:[%s3682_s11 + $0x10] sm:$0xff] }
 0x6ea   :  { %2328 = vmatpush3.bf16.msra.mxu0 %v2327_v12  ;;  %v2330_v15 = vpack.c.bf16 %v1012_v14, %v1011_v13 }
 0x6eb   :  { %2329 = vmatprep.subr.bf16.mxu0 %v3102_v40 }
 0x6ee   :  { %2331 = vmatpush3.bf16.msra.mxu0 %v2330_v15 }
 0x6ef   :  { %2338 = vmatprep.subr.bf16.mxu0 %v3102_v40 }
 0x767   :  { %v829_v23 = vpop.permute.xlu1 %828 }
 0x768   :  { %v834_v25 = vpop.permute.xlu0 %833  ;;  %v836_v26 = vmul.f32 %v829_v23, %v706_v22 }
 0x769   :  { %v837_v28 = vmul.f32 %v834_v25, %v709_v24 }
 0x76a   :  { %v838_v29 = vsel %vm507_vm3, %v836_v26, 0.0 }
 0x76b   :  { %v845_v30 = vsel %vm507_vm3, %v837_v28, 0.0  ;;  %v839_v31 = vrot.slane %v838_v29, 4 }
 0x76c   :  { %v846_v33 = vrot.slane %v845_v30, 4 }
 0x76d   :  { %v840_v34 = vadd.f32 %v839_v31, %v838_v29  ;;  %v2177_v29 = vld [vmem:[#allocation25] ss:$0 sm:$0xff] }
 0x76e   :  { %v847_v35 = vadd.f32 %v846_v33, %v845_v30  ;;  %v2178_v33 = vld [vmem:[#allocation26] ss:$0 sm:$0xff] }
 0x76f   :  { %v841_v36 = vrot.slane %v840_v34, 2 }
 0x770   :  { %v848_v37 = vrot.slane %v847_v35, 2 }
 0x771   :  { %v842_v38 = vadd.f32 %v841_v36, %v840_v34 }
 0x772   :  { %v849_v41 = vadd.f32 %v848_v37, %v847_v35 }
 0x773   :  { %v843_v42 = vrot.slane %v842_v38, 1 }
 0x774   :  { %v850_v27 = vrot.slane %v849_v41, 1 }
 0x775   :  { %v844_v43 = vadd.f32 %v843_v42, %v842_v38 }
 0x776   :  { %v851_v32 = vadd.f32 %v850_v27, %v849_v41 }
 0x778   :  { %v865_v44 = vsel %vm505_vm4, %v851_v32, %v844_v43  ;;  %v1100_v43 = vld [vmem:[#allocation29 + $0x10] sm:$0xff]  ;;  %v1101_v32 = vld [vmem:[#allocation29 + $0x18] sm:$0xff] }
 0x779   :  { %2268 = vmatmul.mubr.msk.f32.vlgmr.msra.gmra.mrb[4].mxu1 %vm507_vm3, %v865_v44  ;;  %v2336_v44 = vpack.c.bf16 %v1101_v32, %v1100_v43 }
 0x77a   :  { %2289 = vmatprep.mubr.msk.f32.mxu1 %vm3101_vm0, %v3100_v1  ;;  %2334 = vmatpush3.bf16.msra.mxu1 %v2333_v19 }
 0x77b   :  { %2335 = vmatprep.subr.bf16.mxu1 %v3102_v40 }
 0x77e   :  { %2337 = vmatpush3.bf16.msra.mxu1 %v2336_v44 }
 0x84c   :  { %v934_v46 = vpop.f32.mrb[4].mxu1 }
 0x84d   :  { %v935_v47 = vadd.f32 %v2175_v45, %v934_v46  ;;  %v2269_v0 = vpop.f32.mrb[5].mxu1  ;;  %v1406_v45 = vld [vmem:[%s3251_s19] sm:$0xff]  ;;  %v1407_v46 = vld [vmem:[%s3251_s19 + $0x8] sm:$0xff] }
 0x84e   :  { %v1233_v0 = vld [vmem:[#allocation35] sm:$0xff] }
 0x84f   :  { %v939_v49 = vrot.slane %v935_v47, 1  ;;  %v940_v50 = vrot.slane %v935_v47, 2  ;;  %v2344_v47 = vpack.c.bf16 %v1407_v46, %v1406_v45 }
 0x851   :  { %v943_v51 = vadd.f32 %v939_v49, %v3418_v63  ;;  %v944_v52 = vadd.f32 %v940_v50, %v3420_v6  ;;  %2345 = vmatprep.subr.bf16.mxu1 %v2344_v47  ;;  %v1234_v49 = vld [vmem:[#allocation35 + $0x8] sm:$0xff] }
 0x852   :  { %v2339_v50 = vpack.c.bf16 %v1234_v49, %v1233_v0 }
 0x853   :  { %v950_v53 = vsel %vm428_vm2, %v943_v51, 0.0  ;;  %v947_v54 = vrot.slane %v944_v52, 7 }
 0x854   :  { %951 = vadd.xlane.f32.xlu1 %v950_v53  ;;  %v3502_v53 = vld [vmem:[#allocation7] sm:$0x3] }
 0x855   :  { %v953_v55 = vsel %vm432_vm1, %v947_v54, 0.0  ;;  %v3504_v54 = vld [vmem:[#allocation8] sm:$0x3] }
 0x856   :  { %954 = vadd.xlane.f32.xlu0 %v953_v55 }
 0x8e1   :  { %v952_v56 = vpop.xlane.xlu1 %951 }
 0x8e2   :  { %v956_v59 = vmul.f32 0.03125, %v952_v56 }
 0x8e3   :  { %v955_v57 = vpop.xlane.xlu0 %954 }
 0x8e4   :  { %v957_v58 = vmul.f32 0.03125, %v955_v57  ;;  %v963_v63 = vsub.f32 %v943_v51, %v956_v59  ;;  %v1235_v51 = vld [vmem:[#allocation35 + $0x10] sm:$0xff]  ;;  %v1246_v57 = vcombine.low %v3502_v53, %v3504_v54 }
 0x8e6   :  { %v960_v60 = vrot.slane %v957_v58, 1  ;;  %v965_v8 = vmul.f32 %v963_v63, %v963_v63 }
 0x8e8   :  { %v964_v61 = vsub.f32 %v944_v52, %v960_v60  ;;  %v972_v9 = vsel %vm428_vm2, %v965_v8, 0.0  ;;  %v1236_v52 = vld [vmem:[#allocation35 + $0x18] sm:$0xff] }
 0x8e9   :  { %v2342_v56 = vpack.c.bf16 %v1236_v52, %v1235_v51  ;;  %v2185_v52 = vld [vmem:[#allocation37] ss:$0 sm:$0xff] }
 0x8ea   :  { %v966_v62 = vmul.f32 %v964_v61, %v964_v61 }
 0x8ec   :  { %v969_v6 = vrot.slane %v966_v62, 7 }
 0x8ee   :  { %v975_v7 = vsel %vm432_vm1, %v969_v6, 0.0 }
 0x8ef   :  { %976 = vadd.xlane.f32.xlu0 %v975_v7 }
 0x8f3   :  { %973 = vadd.xlane.f32.xlu0 %v972_v9 }
 0x97c   :  { %v977_v20 = vpop.xlane.xlu0 %976 }
 0x97d   :  { %v979_v21 = vmul.f32 0.03125, %v977_v20 }
 0x97f   :  { %v981_v22 = vadd.f32 1e-08, %v979_v21 }
 0x980   :  { %v974_v24 = vpop.xlane.xlu0 %973 }
 0x981   :  { %2438 = vrsqrt.f32 %v981_v22  ;;  %v978_v23 = vmul.f32 0.03125, %v974_v24 }
 0x983   :  { %v980_v25 = vadd.f32 1e-08, %v978_v23 }
 0x985   :  { %2440 = vrsqrt.f32 %v980_v25 }
 0x98b   :  { %v2439_v26 = vpop.eup %2438 }
 0x98c   :  { %v986_v28 = vrot.slane %v2439_v26, 1 }
 0x98e   :  { %v990_v30 = vmul.f32 %v986_v28, %v964_v61  ;;  %v3512_v61 = vld [vmem:[%s3683_s15] sm:$0x1f] }
 0x98f   :  { %v2441_v31 = vpop.eup %2440  ;;  %v1328_v62 = vcombine.high %v3512_v61, %v3512_v61 }
 0x990   :  { %v999_v34 = vmul.f32 %v2177_v29, %v990_v30  ;;  %v989_v35 = vmul.f32 %v2441_v31, %v963_v63  ;;  %v3515_v63 = vld [vmem:[%s3683_s15 + $0x8] sm:$0x1f]  ;;  %v2179_v31 = vld [vmem:[#allocation28] ss:$0 sm:$0xff] }
 0x991   :  { %v1374_v6 = vrot.slane %v3515_v63, %v3435_v16  ;;  %v1342_v7 = vrot.slane %v1328_v62, %v3435_v16  ;;  %v1367_v20 = vcombine.high %v3515_v63, %v3515_v63 }
 0x992   :  { %v1008_v36 = vadd.f32 %v2178_v33, %v999_v34  ;;  %v998_v37 = vmul.f32 %v2177_v29, %v989_v35 }
 0x993   :  { %v1382_v8 = vcombine.high %v1374_v6, %v1374_v6  ;;  %v1389_v9 = vrot.slane %v1374_v6, %v3435_v16  ;;  %v1357_v11 = vrot.slane %v1342_v7, %v3435_v16  ;;  %v1381_v25 = vrot.slane %v1367_v20, %v3435_v16 }
 0x994   :  { %v1007_v38 = vadd.f32 %v2178_v33, %v998_v37  ;;  %v1023_v42 = vrot.slane %v1008_v36, 6  ;;  %v1408_v36 = vld [vmem:[%s3251_s19 + $0x10] sm:$0xff]  ;;  %v1409_v37 = vld [vmem:[%s3251_s19 + $0x18] sm:$0xff] }
 0x995   :  { %v1403_v13 = vrot.slane %v1382_v8, %v3435_v16  ;;  %v1404_v14 = vcombine.high %v1389_v9, %v1389_v9  ;;  %v1419_v18 = vcombine.low %v1357_v11, %v1389_v9  ;;  %v1396_v29 = vrot.slane %v1381_v25, %v3435_v16 }
 0x996   :  { %v1022_v41 = vrot.slane %v1007_v38, 7  ;;  %v2348_v44 = vpack.c.bf16 %v1409_v37, %v1408_v36 }
 0x997   :  { %v1420_v19 = vcombine.low %v1403_v13, %v1404_v14  ;;  %v1441_v24 = vrot.slane %v1419_v18, %v3435_v16  ;;  %v1405_v30 = vcombine.high %v1403_v13, %v1403_v13 }
 0x998   :  { %v3494_v27 = vsel %vm505_vm4, %v1023_v42, %v1022_v41 }
 0x999   :  { %2279 = vmatmul.mubr.msk.f32.vlgmr.msra.gmra.mrb[2].mxu0 %vm507_vm3, %v3494_v27  ;;  %v1448_v23 = vrot.slane %v1420_v19, %v3435_v16  ;;  %v1466_v42 = vcombine.low %v1405_v30, %v1396_v29 }
 0x99a   :  { %2300 = vmatprep.mubr.msk.f32.mxu0 %vm3101_vm0, %v3100_v1  ;;  %v3105_v1 = vmov 1983009808   ;;  %2340 = vmatpush3.bf16.msra.mxu0 %v2339_v50 }
 0x99b   :  { %v1248_v55 = vunpack.c.l.s4 %v3105_v1  ;;  %2341 = vmatprep.subr.bf16.mxu0 %v3102_v40  ;;  %v1335_v40 = vrot.slane %v3512_v61, %v3435_v16  ;;  %v1450_v28 = vcombine.low %v1441_v24, %v1448_v23  ;;  %v1473_v45 = vrot.slane %v1466_v42, %v3435_v16 }
 0x99d   :  { %v1249_v58 = vunpack.c.0.s8 %v1248_v55  ;;  %v1350_v10 = vrot.slane %v1335_v40, %v3435_v16  ;;  %v1464_v34 = vrot.slane %v1450_v28, %v3435_v16  ;;  %v1480_v46 = vrot.slane %v1473_v45, %v3435_v16  ;;  %v2187_v55 = vld [vmem:[%s3256_s14] ss:$0 sm:$0xff]  ;;  %s3107_s14 = smov [#allocation38]  }
 0x99e   :  { %2343 = vmatpush3.bf16.msra.mxu0 %v2342_v56  ;;  %s2114_s19 = sshll.u32 %s3107_s14, 4  ;;  %s2115_s19 = int_to_ptr.vmem [resolvable:$true] %s2114_s19 }
 0x99f   :  { %v1252_v59 = vsub.s32 %v1249_v58, %v3381_v2  ;;  %v1343_v2 = vcombine.high %v1335_v40, %v1335_v40  ;;  %s2996_s16 = scalar_lea.vmem %s2115_s19, 16  ;;  %s3000_s13 = scalar_lea.vmem %s2115_s19, 32 }
 0x9a0   :  { %p2997_p2 = scmp.ne.s32.totalorder %s2115_s19, %s2996_s16  ;;  %p3001_p3 = scmp.lt.s32.totalorder %s2115_s19, %s2115_s19 }
 0x9a1   :  { %v1253_v60 = vrot.slane %v1246_v57, %v1252_v59  ;;  %v1364_v12 = vrot.slane %v1343_v2, %v3435_v16  ;;  %p3002_p4 = scmp.lt.s32.totalorder %s3000_s13, %s2996_s16 }
 0x9a3   :  { %2301 = vmatmul.mubr.msk.f32.vlgmr.msra.gmra.mrb[8].mxu0 %vm507_vm3, %v1253_v60  ;;  %v1417_v15 = vcombine.low %v1350_v10, %v1364_v12  ;;  %v2188_v17 = vcombine.high %v1350_v10, %v1364_v12  ;;  %p3003_p5 = por %p3002_p4, %p3001_p3 }
 0x9a5   :  { %v1427_v21 = vrot.slane %v1417_v15, %v3435_v16  ;;  %v1434_v22 = vrot.slane %v2188_v17, %v3435_v16  ;;  %p3004_p6 = pnand %p3003_p5, %p2997_p2 }
 0x9a7   :  { %v1449_v26 = vcombine.low %v1427_v21, %v1434_v22 }
 0x9a9   :  { %v1457_v33 = vrot.slane %v1449_v26, %v3435_v16 }
 0x9ab   :  { %v1465_v43 = vcombine.low %v1457_v33, %v1464_v34 }
 0xa6c   :  { %v1093_v35 = vpop.f32.mrb[2].mxu0 }
 0xa6d   :  { %v1094_v38 = vadd.f32 %v2179_v31, %v1093_v35  ;;  %v2280_v41 = vpop.f32.mrb[3].mxu0 }
 0xa6f   :  { %v1097_v32 = vmax.f32 %v1094_v38, 0.0 }
 0xa71   :  { %2290 = vmatmul.mubr.msk.f32.vlgmr.msra.gmra.mrb[6].mxu1 %vm507_vm3, %v1097_v32 }
 0xa72   :  { %2347 = vmatpush3.bf16.msra.mxu1 %v2344_v47  ;;  %2311 = vmatprep.mubr.msk.f32.mxu1 %vm507_vm3, %v1465_v43 }
 0xa73   :  { %2349 = vmatprep.subr.bf16.mxu1 %v2348_v44 }
 0xa76   :  { %2351 = vmatpush3.bf16.msra.mxu1 %v2348_v44  ;;  %v1322_v0 = vpop.f32.mrb[8].mxu0 }
 0xa77   :  { %v2302_v49 = vpop.f32.mrb[9].mxu0  ;;  %v1323_v1 = vadd.f32 %v2185_v52, %v1322_v0 }
 0xa79   :  { %2312 = vmatmul.mubr.msk.f32.vlgmr.msra.gmra.mrb[8].mxu1 %vm507_vm3, %v1480_v46  ;;  %v1583_v47 = vrot.slane %v1323_v1, %v3435_v16  ;;  %vm2106_vm3 = vcmask 8192  }
 0xa7b   :  { %v1591_v6 = vrot.slane %v1583_v47, %v3435_v16  ;;  %v1584_v9 = vcombine.high %v1583_v47, %v1583_v47 }
 0xa7d   :  { %v1599_v14 = vcombine.high %v1591_v6, %v1591_v6  ;;  %v1598_v24 = vrot.slane %v1584_v9, %v3435_v16  ;;  %v1604_v31 = vrot.slane %v1591_v6, %v3391_v4 }
 0xa7f   :  { %v1612_v33 = vrot.slane %v1599_v14, %v3391_v4  ;;  %v1600_v35 = vcombine.high %v1598_v24, %v1598_v24  ;;  %v1608_v52 = vrot.slane %v1598_v24, %v3391_v4 }
 0xa81   :  { %v1616_v32 = vrot.slane %v1600_v35, %v3391_v4 }
 0xb44   :  { %v3546_v50 = vpop.f32.mrb[6].mxu1 }
 0xb45   :  { %v2291_v51 = vpop.f32.mrb[7].mxu1 }
 0xb4c   :  { %v2313_v56 = vpop.f32.mrb[8].mxu1 }
 0xb4d   :  { %v1557_v57 = vadd.f32 %v2313_v56, %v2187_v55  ;;  %v1551_v58 = vpop.f32.mrb[9].mxu1 }
 0xb4e   :  { %v1552_v59 = vadd.f32 %v2187_v55, %v1551_v58 }
 0xb4f   :  { %v1678_v60 = vrot.slane %v1557_v57, %v3435_v16 }
 0xb50   :  { %v1623_v62 = vcombine.high %v1552_v59, %v1552_v59  ;;  %v1630_v40 = vrot.slane %v1552_v59, %v3435_v16 }
 0xb51   :  { %v1679_v8 = vcombine.high %v1678_v60, %v1678_v60  ;;  %v1686_v20 = vrot.slane %v1678_v60, %v3435_v16 }
 0xb52   :  { %v1637_v7 = vrot.slane %v1623_v62, %v3435_v16  ;;  %v1638_v2 = vcombine.high %v1630_v40, %v1630_v40  ;;  %v1646_v11 = vrot.slane %v1630_v40, %v3435_v16 }
 0xb53   :  { %v1693_v21 = vrot.slane %v1679_v8, %v3435_v16 }
 0xb54   :  { %v1639_v10 = vcombine.high %v1637_v7, %v1637_v7  ;;  %v1653_v12 = vrot.slane %v1637_v7, %v3435_v16  ;;  %v1660_v13 = vrot.slane %v1638_v2, %v3435_v16 }
 0xb55   :  { %v1755_v34 = vrot.slane %v1693_v21, %v3435_v16 }
 0xb56   :  { %v1667_v15 = vrot.slane %v1639_v10, %v3435_v16  ;;  %v1669_v17 = vcombine.high %v1653_v12, %v1653_v12  ;;  %v1694_v18 = vcombine.low %v1646_v11, %v1660_v13  ;;  %v2191_v19 = vcombine.high %v1646_v11, %v1660_v13 }
 0xb57   :  { %v1716_v22 = vrot.slane %v1653_v12, %v3435_v16  ;;  %v1770_v0 = vrot.slane %v1755_v34, %v3435_v16 }
 0xb58   :  { %v1671_v23 = vcombine.high %v1667_v15, %v1667_v15  ;;  %v1702_v25 = vrot.slane %v1694_v18, %v3435_v16  ;;  %v1709_v26 = vrot.slane %v2191_v19, %v3435_v16  ;;  %v1733_v28 = vcombine.low %v1667_v15, %v1669_v17 }
 0xb59   :  { %v1731_v37 = vrot.slane %v1716_v22, %v3435_v16 }
 0xb5a   :  { %v1717_v29 = vcombine.low %v1702_v25, %v1709_v26  ;;  %v1734_v30 = vcombine.low %v1671_v23, %v1686_v20  ;;  %v1741_v38 = vrot.slane %v1733_v28, %v3435_v16 }
 0xb5c   :  { %v1724_v36 = vrot.slane %v1717_v29, %v3435_v16  ;;  %v1748_v41 = vrot.slane %v1734_v30, %v3435_v16 }
 0xb5e   :  { %v1732_v42 = vcombine.low %v1724_v36, %v1731_v37  ;;  %v1756_v43 = vcombine.low %v1741_v38, %v1748_v41  ;;  %v3106_v36 = vmov 7  }
 0xb60   :  { %v1774_v44 = vmul.f32 %v1732_v42, %v1604_v31  ;;  %v1776_v45 = vmul.f32 %v1732_v42, %v1612_v33  ;;  %v1763_v46 = vrot.slane %v1756_v43, %v3435_v16 }
 0xb62   :  { %v1779_v49 = vsel %vm1778_vm6, %v1774_v44, 0.0  ;;  %v1785_v51 = vsel %vm1778_vm6, %v1776_v45, 0.0  ;;  %v1771_v1 = vcombine.low %v1763_v46, %v1770_v0  ;;  %v2181_v44 = vld [vmem:[#allocation31] ss:$0 sm:$0xff] }
 0xb63   :  { %1780 = vadd.xlane.f32.xlu0 %v1779_v49  ;;  %1786 = vadd.xlane.f32.xlu1 %v1785_v51  ;;  %v1179_v46 = vadd.f32 %v2181_v44, %v3546_v50 }
 0xb64   :  { %v1775_v55 = vmul.f32 %v1771_v1, %v1608_v52  ;;  %v1777_v56 = vmul.f32 %v1771_v1, %v1616_v32 }
 0xb65   :  { %v1183_v52 = vadd.f32 %v1179_v46, %v3494_v27 }
 0xb66   :  { %v1782_v57 = vsel %vm1778_vm6, %v1775_v55, 0.0  ;;  %v1788_v58 = vsel %vm1778_vm6, %v1777_v56, 0.0 }
 0xb67   :  { %1783 = vadd.xlane.f32.xlu0 %v1782_v57 }
 0xb6b   :  { %1789 = vadd.xlane.f32.xlu0 %v1788_v58 }
 0xbf0   :  { %v1781_v47 = vpop.xlane.xlu0 %1780  ;;  %v1787_v16 = vpop.xlane.xlu1 %1786 }
 0xbf1   :  { %v1791_v59 = vmul.f32 0.25, %v1781_v47  ;;  %v1793_v6 = vmul.f32 0.25, %v1787_v16 }
 0xbf3   :  { %v1802_v40 = vrot.slane %v1791_v59, %v3450_v39  ;;  %v1810_v11 = vrot.slane %v1793_v6, %v3450_v39 }
 0xbf4   :  { %v1784_v60 = vpop.xlane.xlu0 %1783 }
 0xbf5   :  { %v1792_v62 = vmul.f32 0.25, %v1784_v60 }
 0xbf7   :  { %v1806_v7 = vrot.slane %v1792_v62, %v3450_v39 }
 0xbf8   :  { %v1790_v2 = vpop.xlane.xlu0 %1789 }
 0xbf9   :  { %v1794_v8 = vmul.f32 0.25, %v1790_v2  ;;  %v1815_v9 = vsel %vm505_vm4, %v1806_v7, %v1802_v40  ;;  %v1224_v7 = vld [vmem:[#allocation10] sm:$0x3] }
 0xbfa   :  { %v1820_v10 = vsel %vm1819_vm7, %v1815_v9, -inf }
 0xbfb   :  { %v1814_v12 = vrot.slane %v1794_v8, %v3450_v39  ;;  %1821 = vmax.xlane.f32.xlu1 %v1820_v10  ;;  %v1563_v10 = vrot.slane %v1224_v7, %v3391_v4 }
 0xbfd   :  { %v1816_v13 = vsel %vm505_vm4, %v1814_v12, %v1810_v11  ;;  %v1570_v11 = vrot.slane %v1224_v7, %v3384_v3 }
 0xbfe   :  { %v1823_v14 = vsel %vm1819_vm7, %v1816_v13, -inf }
 0xbff   :  { %1824 = vmax.xlane.f32.xlu0 %v1823_v14  ;;  %v2000_v14 = vmul.f32 %v3502_v53, %v3502_v53 }
 0xc88   :  { %v1822_v15 = vpop.xlane.xlu1 %1821 }
 0xc89   :  { %v1831_v17 = vrot.slane %v1822_v15, %v3391_v4  ;;  %v1835_v18 = vrot.slane %v1822_v15, %v3384_v3 }
 0xc8b   :  { %v1848_v19 = vsub.f32 %v1791_v59, %v1831_v17  ;;  %v1849_v20 = vsub.f32 %v1792_v62, %v1835_v18  ;;  %v2002_v17 = vsel %vm1190_vm8, %v2000_v14, 0.0  ;;  %v2001_v18 = vmul.f32 %v3504_v54, %v3504_v54 }
 0xc8c   :  { %v1825_v21 = vpop.xlane.xlu0 %1824 }
 0xc8d   :  { %v1852_v22 = vmul.f32 1.442695, %v1848_v19  ;;  %v1854_v24 = vmul.f32 1.442695, %v1849_v20  ;;  %v1839_v23 = vrot.slane %v1825_v21, %v3391_v4  ;;  %v1843_v25 = vrot.slane %v1825_v21, %v3384_v3 }
 0xc8f   :  { %2442 = vpow2.f32 %v1852_v22  ;;  %v1850_v26 = vsub.f32 %v1793_v6, %v1839_v23  ;;  %v1851_v28 = vsub.f32 %v1794_v8, %v1843_v25 }
 0xc90   :  { %2444 = vpow2.f32 %v1854_v24 }
 0xc91   :  { %v1856_v29 = vmul.f32 1.442695, %v1850_v26  ;;  %v1858_v30 = vmul.f32 1.442695, %v1851_v28 }
 0xc93   :  { %2446 = vpow2.f32 %v1856_v29 }
 0xc94   :  { %2448 = vpow2.f32 %v1858_v30 }
 0xc99   :  { %v2443_v31 = vpop.eup %2442 }
 0xc9a   :  { %v2445_v33 = vpop.eup %2444  ;;  %1865 = vperm.xlu1 %2416, %v2443_v31  }
 0xc9b   :  { %1868 = vperm.xlu0 %2417, %v2445_v33  }
 0xc9d   :  { %v2447_v34 = vpop.eup %2446 }
 0xc9e   :  { %1871 = vperm.xlu1 %2416, %v2447_v34   ;;  %v2449_v35 = vpop.eup %2448 }
 0xca2   :  { %1874 = vperm.xlu1 %2416, %v2449_v35  }
 0xca6   :  { %2418 = vset.pattern.permute.xlu1 %v3106_v36 }
 0xca7   :  { %1186 = vperm.xlu1 %2418, %v3393_v5  }
 0xcab   :  { %2419 = vset.pattern.permute.xlu1 %v3104_v48 }
 0xd19   :  { %v1866_v37 = vpop.permute.xlu1 %1865 }
 0xd1a   :  { %v1879_v38 = vrot.slane %v1866_v37, %v3450_v39  ;;  %v1869_v41 = vpop.permute.xlu0 %1868 }
 0xd1b   :  { %v1883_v42 = vrot.slane %v1869_v41, %v3450_v39 }
 0xd1d   :  { %v1872_v43 = vpop.permute.xlu1 %1871  ;;  %v1892_v32 = vsel %vm505_vm4, %v1883_v42, %v1879_v38 }
 0xd1e   :  { %v1896_v45 = vsel %vm1819_vm7, %v1892_v32, 0.0  ;;  %v1887_v5 = vrot.slane %v1872_v43, %v3450_v39 }
 0xd1f   :  { %1897 = vadd.xlane.f32.xlu0 %v1896_v45 }
 0xd21   :  { %v1875_v0 = vpop.permute.xlu1 %1874 }
 0xd22   :  { %v1891_v48 = vrot.slane %v1875_v0, %v3450_v39 }
 0xd24   :  { %v1893_v49 = vsel %vm505_vm4, %v1891_v48, %v1887_v5 }
 0xd25   :  { %v1899_v51 = vsel %vm1819_vm7, %v1893_v49, 0.0 }
 0xd26   :  { %1900 = vadd.xlane.f32.xlu1 %v1899_v51  ;;  %v1187_v1 = vpop.permute.xlu1 %1186 }
 0xd27   :  { %v1189_v55 = vmul.f32 %v1187_v1, %v1183_v52 }
 0xd29   :  { %v1191_v56 = vsel %vm1190_vm8, %v1189_v55, 0.0 }
 0xd2a   :  { %1192 = vadd.xlane.f32.xlu0 %v1191_v56 }
 0xdac   :  { %v1898_v57 = vpop.xlane.xlu0 %1897 }
 0xdad   :  { %v1907_v50 = vrot.slane %v1898_v57, %v3391_v4  ;;  %v1911_v58 = vrot.slane %v1898_v57, %v3384_v3 }
 0xdaf   :  { %2450 = vrcp.f32 %v1907_v50 }
 0xdb0   :  { %2452 = vrcp.f32 %v1911_v58 }
 0xdb3   :  { %v1901_v47 = vpop.xlane.xlu1 %1900 }
 0xdb4   :  { %v1915_v59 = vrot.slane %v1901_v47, %v3391_v4  ;;  %v1919_v16 = vrot.slane %v1901_v47, %v3384_v3  ;;  %v2005_v3 = vsel %vm1190_vm8, %v2001_v18, 0.0 }
 0xdb6   :  { %2454 = vrcp.f32 %v1915_v59 }
 0xdb7   :  { %2456 = vrcp.f32 %v1919_v16  ;;  %v1193_v12 = vpop.xlane.xlu0 %1192 }
 0xdb8   :  { %v1194_v13 = vmul.f32 0.03125, %v1193_v12 }
 0xdb9   :  { %v2451_v27 = vpop.eup %2450 }
 0xdba   :  { %v2453_v60 = vpop.eup %2452  ;;  %v1925_v62 = vmul.f32 %v2451_v27, %v2443_v31  ;;  %v3612_v15 = vsub.f32 %v1189_v55, %v1194_v13 }
 0xdbb   :  { %v1927_v40 = vmul.f32 %v2453_v60, %v2445_v33 }
 0xdbc   :  { %1934 = vperm.xlu0 %2417, %v1925_v62   ;;  %v1196_v4 = vmul.f32 %v3612_v15, %v3612_v15 }
 0xdbd   :  { %1939 = vperm.xlu1 %2419, %v1927_v40  }
 0xdbe   :  { %v1197_v19 = vsel %vm1190_vm8, %v1196_v4, 0.0 }
 0xdc0   :  { %v2455_v6 = vpop.eup %2454 }
 0xdc1   :  { %v2457_v2 = vpop.eup %2456  ;;  %v1929_v8 = vmul.f32 %v2455_v6, %v2447_v34 }
 0xdc2   :  { %v1931_v9 = vmul.f32 %v2457_v2, %v2449_v35 }
 0xdc3   :  { %1944 = vperm.xlu1 %2419, %v1929_v8  }
 0xdc4   :  { %1949 = vperm.xlu0 %2417, %v1931_v9  }
 0xdc7   :  { %1565 = vbcast.lane.b32.xlu1 %v1563_v10, 256 }
 0xdc8   :  { %1572 = vbcast.lane.b32.xlu0 %v1570_v11, 256 }
 0xde7   :  { %2003 = vadd.xlane.f32.xlu0 %v2002_v17 }
 0xdeb   :  { %1198 = vadd.xlane.f32.xlu1 %v1197_v19  ;;  %2006 = vadd.xlane.f32.xlu0 %v2005_v3  ;;  %v2183_v3 = vld [vmem:[#allocation32] ss:$0 sm:$0xff] }
 0xe3b   :  { %v1935_v21 = vpop.permute.xlu0 %1934 }
 0xe3c   :  { %v1940_v20 = vpop.permute.xlu1 %1939 }
 0xe42   :  { %v1945_v22 = vpop.permute.xlu1 %1944 }
 0xe43   :  { %v1950_v24 = vpop.permute.xlu0 %1949 }
 0xe46   :  { %v1566_v23 = vpop.permute.xlu1 %1565 }
 0xe47   :  { %v1574_v25 = vmul.f32 %v1566_v23, %v3512_v61  ;;  %v1573_v26 = vpop.permute.xlu0 %1572 }
 0xe48   :  { %v1575_v28 = vmul.f32 %v1573_v26, %v3515_v63 }
 0xe49   :  { %v1952_v29 = vmul.f32 %v1935_v21, %v1574_v25  ;;  %v1954_v30 = vmul.f32 %v1945_v22, %v1574_v25 }
 0xe4a   :  { %v1953_v31 = vmul.f32 %v1940_v20, %v1575_v28  ;;  %v1955_v33 = vmul.f32 %v1950_v24, %v1575_v28  ;;  %v2184_v20 = vld [vmem:[#allocation34] ss:$0 sm:$0xff] }
 0xe4b   :  { %v1956_v34 = vsel %vm1778_vm6, %v1952_v29, 0.0  ;;  %v1970_v35 = vsel %vm1778_vm6, %v1954_v30, 0.0 }
 0xe4c   :  { %v1957_v36 = vrot.slane %v1956_v34, 4  ;;  %v1971_v37 = vrot.slane %v1970_v35, 4  ;;  %v1963_v38 = vsel %vm1778_vm6, %v1953_v31, 0.0  ;;  %v1977_v41 = vsel %vm1778_vm6, %v1955_v33, 0.0 }
 0xe4d   :  { %v1964_v42 = vrot.slane %v1963_v38, 4  ;;  %v1978_v43 = vrot.slane %v1977_v41, 4 }
 0xe4e   :  { %v1958_v61 = vadd.f32 %v1957_v36, %v1956_v34  ;;  %v1972_v32 = vadd.f32 %v1971_v37, %v1970_v35 }
 0xe4f   :  { %v1965_v44 = vadd.f32 %v1964_v42, %v1963_v38  ;;  %v1979_v63 = vadd.f32 %v1978_v43, %v1977_v41 }
 0xe50   :  { %v1959_v45 = vrot.slane %v1958_v61, 2  ;;  %v1973_v46 = vrot.slane %v1972_v32, 2 }
 0xe51   :  { %v1966_v0 = vrot.slane %v1965_v44, 2  ;;  %v1980_v5 = vrot.slane %v1979_v63, 2 }
 0xe52   :  { %v1960_v48 = vadd.f32 %v1959_v45, %v1958_v61  ;;  %v1974_v49 = vadd.f32 %v1973_v46, %v1972_v32 }
 0xe53   :  { %v1967_v51 = vadd.f32 %v1966_v0, %v1965_v44  ;;  %v1981_v52 = vadd.f32 %v1980_v5, %v1979_v63 }
 0xe54   :  { %v1961_v1 = vrot.slane %v1960_v48, 1  ;;  %v1975_v55 = vrot.slane %v1974_v49, 1 }
 0xe55   :  { %v1968_v56 = vrot.slane %v1967_v51, 1  ;;  %v1982_v57 = vrot.slane %v1981_v52, 1 }
 0xe56   :  { %v1976_v50 = vadd.f32 %v1975_v55, %v1974_v49  ;;  %v1962_v58 = vadd.f32 %v1961_v1, %v1960_v48 }
 0xe57   :  { %v1983_v47 = vadd.f32 %v1982_v57, %v1981_v52  ;;  %v1969_v59 = vadd.f32 %v1968_v56, %v1967_v51 }
 0xe58   :  { %v2026_v16 = vmul.f32 %v1976_v50, %v1976_v50  ;;  %v2024_v27 = vmul.f32 %v1962_v58, %v1962_v58 }
 0xe59   :  { %v2027_v60 = vmul.f32 %v1983_v47, %v1983_v47  ;;  %v2025_v62 = vmul.f32 %v1969_v59, %v1969_v59  ;;  %v1989_v40 = vsel %vm505_vm4, %v1983_v47, %v1976_v50  ;;  %v1988_v6 = vsel %vm505_vm4, %v1969_v59, %v1962_v58 }
 0xe5a   :  { %v1993_v10 = vmul.f32 %v1989_v40, %v3504_v54  ;;  %v1992_v11 = vmul.f32 %v1988_v6, %v3502_v53 }
 0xe5b   :  { %v2033_v7 = vsel %vm505_vm4, %v2027_v60, %v2026_v16  ;;  %v2032_v2 = vsel %vm505_vm4, %v2025_v62, %v2024_v27 }
 0xe5c   :  { %v2039_v8 = vsel %vm1190_vm8, %v2033_v7, 0.0  ;;  %v2036_v9 = vsel %vm1190_vm8, %v2032_v2, 0.0  ;;  %v1997_v12 = vsel %vm1190_vm8, %v1993_v10, 0.0  ;;  %v1994_v13 = vsel %vm1190_vm8, %v1992_v11, 0.0 }
 0xe5d   :  { %2040 = vadd.xlane.f32.xlu1 %v2039_v8  ;;  %2037 = vadd.xlane.f32.xlu0 %v2036_v9 }
 0xe61   :  { %1998 = vadd.xlane.f32.xlu1 %v1997_v12  ;;  %1995 = vadd.xlane.f32.xlu0 %v1994_v13 }
 0xe74   :  { %v2004_v28 = vpop.xlane.xlu0 %2003 }
 0xe75   :  { %vm2010_vm9 = vcmp.eq.f32.partialorder %v2004_v28, inf  ;;  %vm2012_vm11 = vcmp.eq.f32.partialorder %v2004_v28, 0.0 }
 0xe78   :  { %v1199_v14 = vpop.xlane.xlu1 %1198  ;;  %v2007_v29 = vpop.xlane.xlu0 %2006 }
 0xe79   :  { %v1200_v17 = vmul.f32 0.03125, %v1199_v14  ;;  %vm2017_vm10 = vcmp.eq.f32.partialorder %v2007_v29, inf  ;;  %v2020_v36 = vand.u32 2147483648, %v2007_v29  ;;  %vm2019_vm12 = vcmp.eq.f32.partialorder %v2007_v29, 0.0 }
 0xe7b   :  { %v1201_v18 = vadd.f32 1e-08, %v1200_v17 }
 0xe7d   :  { %2458 = vrsqrt.f32 %v1201_v18 }
 0xe7e   :  { %2460 = vrsqrt.f32 %v2004_v28 }
 0xe7f   :  { %2462 = vrsqrt.f32 %v2007_v29 }
 0xe87   :  { %v2459_v4 = vpop.eup %2458 }
 0xe88   :  { %v1203_v19 = vmul.f32 %v2459_v4, %v3612_v15  ;;  %v2461_v15 = vpop.eup %2460 }
 0xe89   :  { %v2463_v33 = vpop.eup %2462  ;;  %v2009_v34 = vmul.f32 %v2461_v15, %v2004_v28 }
 0xe8a   :  { %v1211_v21 = vmul.f32 %v2183_v3, %v1203_v19 }
 0xe8b   :  { %v2011_v35 = vsel %vm2010_vm9, %v2004_v28, %v2009_v34 }
 0xe8c   :  { %v1219_v22 = vadd.f32 %v2184_v20, %v1211_v21 }
 0xe8e   :  { %v1226_v24 = vmul.f32 %v3504_v54, %v1219_v22  ;;  %v1225_v23 = vmul.f32 %v3502_v53, %v1219_v22  ;;  %v2016_v54 = vmul.f32 %v2463_v33, %v2007_v29  ;;  %v2013_v53 = vand.u32 2147483648, %v2004_v28 }
 0xe90   :  { %v1230_v25 = vsel %vm1190_vm8, %v1226_v24, 0.0  ;;  %v1227_v26 = vsel %vm1190_vm8, %v1225_v23, 0.0  ;;  %v2018_v37 = vsel %vm2017_vm10, %v2007_v29, %v2016_v54  ;;  %v2014_v42 = vsel %vm2012_vm11, %v2013_v53, %v2011_v35 }
 0xe91   :  { %1231 = vadd.xlane.f32.xlu1 %v1230_v25  ;;  %1228 = vadd.xlane.f32.xlu0 %v1227_v26  ;;  %v2021_v61 = vsel %vm2019_vm12, %v2020_v36, %v2018_v37  ;;  %v2022_v51 = vmax.f32 %v2014_v42, 1e-08 }
 0xe92   :  { %v2023_v49 = vmax.f32 %v2021_v61, 1e-08 }
 0xeea   :  { %v2041_v30 = vpop.xlane.xlu1 %2040  ;;  %v2038_v31 = vpop.xlane.xlu0 %2037 }
 0xeeb   :  { %2464 = vrsqrt.f32 %v2041_v30  ;;  %vm2051_vm13 = vcmp.eq.f32.partialorder %v2041_v30, inf  ;;  %v2054_v32 = vand.u32 2147483648, %v2041_v30  ;;  %vm2053_vm14 = vcmp.eq.f32.partialorder %v2041_v30, 0.0 }
 0xeec   :  { %2466 = vrsqrt.f32 %v2038_v31  ;;  %vm2044_vm15 = vcmp.eq.f32.partialorder %v2038_v31, inf  ;;  %v2047_v45 = vand.u32 2147483648, %v2038_v31  ;;  %vm2046_vm0 = vcmp.eq.f32.partialorder %v2038_v31, 0.0 }
 0xeee   :  { %v1999_v57 = vpop.xlane.xlu1 %1998  ;;  %v1996_v47 = vpop.xlane.xlu0 %1995 }
 0xef5   :  { %v2465_v38 = vpop.eup %2464 }
 0xef6   :  { %v2467_v41 = vpop.eup %2466  ;;  %v2050_v43 = vmul.f32 %v2465_v38, %v2041_v30 }
 0xef7   :  { %v2043_v44 = vmul.f32 %v2467_v41, %v2038_v31 }
 0xef8   :  { %v2052_v63 = vsel %vm2051_vm13, %v2041_v30, %v2050_v43 }
 0xef9   :  { %v2055_v46 = vsel %vm2053_vm14, %v2054_v32, %v2052_v63  ;;  %v2045_v0 = vsel %vm2044_vm15, %v2038_v31, %v2043_v44 }
 0xefa   :  { %v2048_v5 = vsel %vm2046_vm0, %v2047_v45, %v2045_v0  ;;  %v2057_v48 = vmax.f32 %v2055_v46, 1e-08 }
 0xefb   :  { %v2056_v52 = vmax.f32 %v2048_v5, 1e-08 }
 0xefc   :  { %v2059_v1 = vmul.f32 %v2057_v48, %v2023_v49 }
 0xefd   :  { %v2058_v55 = vmul.f32 %v2056_v52, %v2022_v51 }
 0xefe   :  { %2468 = vrcp.f32 %v2059_v1 }
 0xeff   :  { %2470 = vrcp.f32 %v2058_v55 }
 0xf08   :  { %v2469_v56 = vpop.eup %2468 }
 0xf09   :  { %v2471_v50 = vpop.eup %2470  ;;  %v2063_v58 = vmul.f32 %v2469_v56, %v1999_v57 }
 0xf0a   :  { %v2061_v59 = vmul.f32 %v2471_v50, %v1996_v47 }
 0xf0b   :  { %v2193_v16 = vmul.f32 -1.442695, %v2063_v58 }
 0xf0c   :  { %v2192_v27 = vmul.f32 -1.442695, %v2061_v59 }
 0xf0d   :  { %2472 = vpow2.f32 %v2193_v16 }
 0xf0e   :  { %2474 = vpow2.f32 %v2192_v27 }
 0xf17   :  { %v2473_v60 = vpop.eup %2472 }
 0xf18   :  { %v2475_v62 = vpop.eup %2474  ;;  %v2071_v40 = vadd.f32 1.0, %v2473_v60 }
 0xf19   :  { %v2070_v9 = vadd.f32 1.0, %v2475_v62 }
 0xf1a   :  { %2476 = vrcp.f32 %v2071_v40 }
 0xf1e   :  { %v1232_v6 = vpop.xlane.xlu1 %1231  ;;  %v1229_v7 = vpop.xlane.xlu0 %1228 }
 0xf1f   :  { %v2081_v2 = vmin.f32 %v1232_v6, 0.0  ;;  %v2080_v8 = vmin.f32 %v1229_v7, 0.0  ;;  %v2079_v13 = vadd.f32 1.0, %v1232_v6  ;;  %vm2077_vm1 = vcmp.gt.f32.partialorder %v1232_v6, 0.0 }
 0xf20   :  { %v2078_v17 = vadd.f32 1.0, %v1229_v7  ;;  %vm2076_vm2 = vcmp.gt.f32.partialorder %v1229_v7, 0.0 }
 0xf21   :  { %v2084_v10 = vmul.f32 1.442695, %v2081_v2  ;;  %v2082_v11 = vmul.f32 1.442695, %v2080_v8 }
 0xf23   :  { %2478 = vpow2.f32 %v2084_v10 }
 0xf24   :  { %2480 = vpow2.f32 %v2082_v11  ;;  %v2477_v12 = vpop.eup %2476 }
 0xf25   :  { %2482 = vrcp.f32 %v2070_v9 }
 0xf2d   :  { %v2479_v14 = vpop.eup %2478 }
 0xf2e   :  { %v2481_v18 = vpop.eup %2480  ;;  %v2087_v4 = vsel %vm2077_vm1, %v2079_v13, %v2479_v14 }
 0xf2f   :  { %v2483_v3 = vpop.eup %2482  ;;  %v2089_v19 = vmul.f32 %v2477_v12, %v2087_v4  ;;  %v2086_v20 = vsel %vm2076_vm2, %v2078_v17, %v2481_v18 }
 0xf30   :  { %v2088_v21 = vmul.f32 %v2483_v3, %v2086_v20 }
 0xf32   :  { %v2090_v22 = vsub.f32 %v2088_v21, %v2089_v19 }
 0xf34   :  { %v2194_v24 = vmul.f32 -1.442695, %v2090_v22 }
 0xf36   :  { %2484 = vpow2.f32 %v2194_v24 }
 0xf40   :  { %v2485_v23 = vpop.eup %2484 }
 0xf41   :  { %v2094_v25 = vadd.f32 1.0, %v2485_v23 }
 0xf43   :  { %2486 = vrcp.f32 %v2094_v25 }
 0xf4d   :  { %v2487_v26 = vpop.eup %2486 }
 0xf4e   :  { %v2097_v28 = vadd.f32 1e-10, %v2487_v26 }
 0xf50   :  { %2488 = vlog2.f32 %v2097_v28 }
 0xf5a   :  { %v2489_v29 = vpop.eup %2488 }
 0xf5b   :  { %v2099_v30 = vmul.f32 0.6931472, %v2489_v29 }
 0xf5d   :  { %v2104_v31 = vrot.slane %v2099_v30, %v3450_v39 }
 0xf5f   :  { %2107 = vst.msk [vmem:[#allocation38] sm:$0x1] %vm2106_vm3, %v2104_v31 }
 0xf60   :  { %3007 = shalt.err (!%p3004_p6)
}
 0xf61   :  { %s3008_s8 = scalar_lea.hbm %s3261_s3, 16 }
 0xf62   :  { %p3009_p7 = scmp.ne.s32.totalorder %s3261_s3, %s3008_s8  ;;  %p3012_p8 = scmp.lt.u32.totalorder %s3008_s8, %s3261_s3 }
 0xf64   :  { %p3014_p9 = pnand %p3012_p8, %p3009_p7 }
 0xf66   :  { %3017 = shalt.err (!%p3014_p9)
}
 0xf67   :  { %2117 = dma.vmem_to_hbm [thread:$0]  %s2115_s19, 16, %s3261_s3, [#allocation4]  }
 0xf68   :  { %3042 = dma.done.wait [#allocation4], 16  }
 0xf69   :  { %3043 = vsyncadd [#allocation4], 4294967280 }
 0xf6a   :  { %2121 = vsyncpa [#allocation3], 1 }
 0xf6b   :  { %2122 = vsyncpa [#allocation6], 1 }
 0xf6c   :  { %2123 = vsyncpa [#allocation9], 1 }
 0xf6d   :  { %2124 = vsyncpa [#allocation12], 1 }
 0xf6e   :  { %2125 = vsyncpa [#allocation15], 1 }
 0xf6f   :  { %2126 = vsyncpa [#allocation18], 1 }
 0xf70   :  { %2127 = vsyncpa [#allocation21], 1 }
 0xf71   :  { %2128 = vsyncpa [#allocation24], 1 }
 0xf72   :  { %2129 = vsyncpa [#allocation27], 1 }
 0xf73   :  { %2130 = vsyncpa [#allocation30], 1 }
 0xf74   :  { %2131 = vsyncpa [#allocation33], 1 }
 0xf75   :  { %2132 = vsyncpa [#allocation36], 1 }
 0xf76   :  { %2133 = vsyncpa [#allocation4], 1 }

</bundles_post_ra>
